<compile_context>
chip_gen: v6e
topology: v6e:2x2x1
jax: 0.10.0
libtpu: 0.0.40
codegen_flags: <defaults>
</compile_context>

<pallas_src>
import functools

import jax
import jax.numpy as jnp
import numpy as np
from jax import lax
from jax.experimental import pallas as pl
from jax.experimental.pallas import tpu as pltpu

ROW_TILE = 512     # target rows of the im2col matrix per grid step
K_TILE = 512       # reduction tile (only used when K is large)
LANE = 128


def _round_up(x, m):
    return ((x + m - 1) // m) * m


def _pick_row_tile(m, target=ROW_TILE):
    return target if m >= target else _round_up(m, 16)


def _apply_act(a, act):
    if act == "leaky_relu":
        return jnp.where(a > 0, a, jnp.asarray(0.2, a.dtype) * a)
    if act == "relu":
        return jnp.maximum(a, jnp.zeros_like(a))
    return a


# ---------------------------------------------------------------------------
# Pallas kernels
# ---------------------------------------------------------------------------
def _mm_single_kernel(a_ref, b_ref, o_ref, *stat_refs, act):
    """o = act(a) @ b (single reduction tile); optional per-column sum/sumsq."""
    r = jnp.dot(_apply_act(a_ref[...], act).astype(jnp.bfloat16), b_ref[...],
                preferred_element_type=jnp.float32)
    o_ref[...] = r.astype(o_ref.dtype)
    if stat_refs:
        sum_ref, sq_ref = stat_refs
        sum_ref[...] = jnp.sum(r, axis=0, keepdims=True)[None]
        sq_ref[...] = jnp.sum(r * r, axis=0, keepdims=True)[None]


def _mm_multi_kernel(a_ref, b_ref, o_ref, *rest, act):
    """acc += act(a) @ b over the K grid axis; write (and stats) at the last step."""
    acc_ref = rest[-1]
    stat_refs = rest[:-1]

    @pl.when(pl.program_id(1) == 0)
    def _():
        acc_ref[...] = jnp.zeros_like(acc_ref)

    acc_ref[...] += jnp.dot(_apply_act(a_ref[...], act).astype(jnp.bfloat16),
                            b_ref[...], preferred_element_type=jnp.float32)

    @pl.when(pl.program_id(1) == pl.num_programs(1) - 1)
    def _():
        r = acc_ref[...]
        o_ref[...] = r.astype(o_ref.dtype)
        if stat_refs:
            sum_ref, sq_ref = stat_refs
            sum_ref[...] = jnp.sum(r, axis=0, keepdims=True)[None]
            sq_ref[...] = jnp.sum(r * r, axis=0, keepdims=True)[None]


def matmul_act(a, b, act, out_dtype=jnp.float32, with_stats=False):
    """act(a) @ b, tiled over rows (parallel) and (if large) K (accumulated).

    Output columns are padded to a multiple of 128 (lane-dense unmasked stores);
    callers slice the real columns afterwards.  If with_stats, also returns the
    per-column sum and sum-of-squares of the (unsliced-row) result — used to fuse
    BatchNorm statistics into this matmul's epilogue.
    """
    m, k = a.shape
    _, n = b.shape

    tm = _pick_row_tile(m)
    mp = _round_up(m, tm)
    np_ = _round_up(n, LANE)
    if k > K_TILE:
        tk = K_TILE
        kp = _round_up(k, tk)
    else:
        tk = _round_up(k, 16)
        kp = tk
    gm, gk = mp // tm, kp // tk

    if (mp, kp) != (m, k):
        a = jnp.pad(a, ((0, mp - m), (0, kp - k)))
    if (kp, np_) != (k, n):
        b = jnp.pad(b, ((0, kp - k), (0, np_ - n)))
    b = b.astype(jnp.bfloat16)           # halve weight VMEM footprint, bf16 MXU

    out_shape = [jax.ShapeDtypeStruct((mp, np_), out_dtype)]
    if with_stats:
        out_shape += [jax.ShapeDtypeStruct((gm, 1, np_), jnp.float32)] * 2

    if gk == 1:
        out_specs = [pl.BlockSpec((tm, np_), lambda i: (i, 0))]
        if with_stats:
            out_specs += [pl.BlockSpec((1, 1, np_), lambda i: (i, 0, 0))] * 2
        res = pl.pallas_call(
            functools.partial(_mm_single_kernel, act=act),
            out_shape=tuple(out_shape),
            grid_spec=pltpu.PrefetchScalarGridSpec(
                num_scalar_prefetch=0,
                grid=(gm,),
                in_specs=[pl.BlockSpec((tm, kp), lambda i: (i, 0)),
                          pl.BlockSpec((kp, np_), lambda i: (0, 0))],
                out_specs=tuple(out_specs),
            ),
            compiler_params=pltpu.CompilerParams(
                dimension_semantics=("parallel",)),
        )(a, b)
    else:
        out_specs = [pl.BlockSpec((tm, np_), lambda i, j: (i, 0))]
        if with_stats:
            out_specs += [pl.BlockSpec((1, 1, np_), lambda i, j: (i, 0, 0))] * 2
        res = pl.pallas_call(
            functools.partial(_mm_multi_kernel, act=act),
            out_shape=tuple(out_shape),
            grid_spec=pltpu.PrefetchScalarGridSpec(
                num_scalar_prefetch=0,
                grid=(gm, gk),
                in_specs=[pl.BlockSpec((tm, tk), lambda i, j: (i, j)),
                          pl.BlockSpec((tk, np_), lambda i, j: (j, 0))],
                out_specs=tuple(out_specs),
                scratch_shapes=[pltpu.VMEM((tm, np_), jnp.float32)],
            ),
            compiler_params=pltpu.CompilerParams(
                dimension_semantics=("parallel", "arbitrary")),
        )(a, b)

    out = res[0][:m, :n]
    if with_stats:
        # fold the per-row-tile partial stats (padded rows are zero => no-op)
        col_sum = res[1].sum(axis=(0, 1))[:n]
        col_sq = res[2].sum(axis=(0, 1))[:n]
        return out, col_sum, col_sq
    return out


def _bn_apply_concat_kernel(x_ref, u_ref, s_ref, t_ref, o_ref, *, cx):
    """out = [x | u*scale + shift] per row tile (scale/shift precomputed)."""
    o_ref[:, :cx] = x_ref[...]
    o_ref[:, cx:] = u_ref[...] * s_ref[...] + t_ref[...]


def bn_apply_concat(x_mat, u_mat, scale, shift):
    """[x_mat | u_mat*scale + shift] along channels, row-tiled (fused concat)."""
    m, cu = u_mat.shape
    cx = x_mat.shape[1]
    tm = _pick_row_tile(m)
    mp = _round_up(m, tm)
    if mp != m:
        x_mat = jnp.pad(x_mat, ((0, mp - m), (0, 0)))
        u_mat = jnp.pad(u_mat, ((0, mp - m), (0, 0)))
    s = scale.reshape(1, cu).astype(jnp.float32)
    t = shift.reshape(1, cu).astype(jnp.float32)

    out = pl.pallas_call(
        functools.partial(_bn_apply_concat_kernel, cx=cx),
        out_shape=jax.ShapeDtypeStruct((mp, cx + cu), jnp.float32),
        grid_spec=pltpu.PrefetchScalarGridSpec(
            num_scalar_prefetch=0,
            grid=(mp // tm,),
            in_specs=[
                pl.BlockSpec((tm, cx), lambda i: (i, 0)),
                pl.BlockSpec((tm, cu), lambda i: (i, 0)),
                pl.BlockSpec((1, cu), lambda i: (0, 0)),
                pl.BlockSpec((1, cu), lambda i: (0, 0)),
            ],
            out_specs=pl.BlockSpec((tm, cx + cu), lambda i: (i, 0)),
        ),
        compiler_params=pltpu.CompilerParams(
            dimension_semantics=("parallel",)),
    )(x_mat, u_mat, s, t)
    return out[:m]


# ---------------------------------------------------------------------------
# Plain-JAX glue: im2col, weight reshapes
# ---------------------------------------------------------------------------
def _im2col(x_nhwc, k, stride, pad):
    # TODO(synk): fuse patch extraction into the matmul kernel via halo'd spatial
    # BlockSpecs instead of materializing the (M, k*k*C) matrix in HBM.
    x = jnp.pad(x_nhwc, ((0, 0), (pad, pad), (pad, pad), (0, 0)))
    n, hp, wp, c = x.shape
    ho = (hp - k) // stride + 1
    wo = (wp - k) // stride + 1
    cols = []
    for i in range(k):
        for j in range(k):
            cols.append(
                lax.slice(
                    x,
                    (0, i, j, 0),
                    (n, i + stride * (ho - 1) + 1, j + stride * (wo - 1) + 1, c),
                    (1, stride, stride, 1),
                ))
    p = jnp.stack(cols, axis=3)   # (n, ho, wo, k*k, c)
    return p.reshape(n * ho * wo, k * k * c), (n, ho, wo)


def _conv_w_to_mat(w_oihw):
    # PyTorch Conv2d (O, I, kh, kw) -> im2col weight matrix (kh*kw*I, O)
    o, i, kh, kw = w_oihw.shape
    return jnp.transpose(w_oihw, (2, 3, 1, 0)).reshape(kh * kw * i, o)


def _convtranspose_subpixel_wmat(w_up):
    """ConvTranspose2d(k=4, s=2, p=1) as ONE 3x3 stride-1 conv whose output
    channels are the 4 sub-pixel phases (a,b) x nf. No dilated zeros are ever
    materialized or multiplied. out[2u+a, 2v+b, co] = sum_{ci,di,dj}
      w_up[ci, co, 3-(a+2di), 3-(b+2dj)] * pad1(h)[u+a+di, v+b+dj, ci]
    """
    ni, nf = w_up.shape[0], w_up.shape[1]
    # equivalent ordinary-conv kernel: wc[co, ci, kh, kw] = w_up[ci, co, 3-kh, 3-kw]
    wc = jnp.transpose(w_up[:, :, ::-1, ::-1], (1, 0, 2, 3))
    wmat = jnp.zeros((3, 3, ni, 4, nf), w_up.dtype)
    for a in range(2):            # output row phase
        for b in range(2):        # output col phase
            for di in range(2):
                for dj in range(2):
                    tap = jnp.transpose(wc[:, :, a + 2 * di, b + 2 * dj], (1, 0))
                    wmat = wmat.at[a + di, b + dj, :, 2 * a + b, :].set(tap)
    return wmat.reshape(9 * ni, 4 * nf)


# ---------------------------------------------------------------------------
# UnetBlock (innermost) forward
# ---------------------------------------------------------------------------
def unet_block_innermost_forward(x_nchw, w_down, w_up, gamma, beta, eps=1e-5):
    # x_nchw: (N, nf, H, W); w_down: (ni, nf, 4, 4) Conv2d weight (O,I,kh,kw);
    # w_up: (ni, nf, 4, 4) ConvTranspose2d weight (I,O,kh,kw); gamma/beta: (nf,)
    ni = w_down.shape[0]
    nf = w_up.shape[1]
    x = jnp.transpose(x_nchw, (0, 2, 3, 1))       # NHWC (channels -> lanes)
    n, h, w, cin = x.shape

    # ---- down: LeakyReLU(0.2) fused + Conv2d(k=4, s=2, p=1, bias=False) ----
    a, (_, ho, wo) = _im2col(x, 4, 2, 1)
    hdn = matmul_act(a, _conv_w_to_mat(w_down), act="leaky_relu",
                     out_dtype=jnp.bfloat16)      # bf16 intermediate: half HBM
    hdn = hdn.reshape(n, ho, wo, ni)

    # ---- up: ReLU fused + ConvTranspose2d(k=4, s=2, p=1, bias=False) -------
    # sub-pixel decomposition: one 3x3 stride-1 conv over hdn; the 4 output
    # phases come out as 4*nf lane-dense columns and are interleaved below.
    # BatchNorm sum / sumsq are produced by the same kernel (stats are
    # permutation-invariant, so the pre-interleave phase layout is fine).
    a2, _ = _im2col(hdn, 3, 1, 1)
    u4, u_sum4, u_sq4 = matmul_act(a2, _convtranspose_subpixel_wmat(w_up),
                                   act="relu", out_dtype=jnp.float32,
                                   with_stats=True)
    u = u4.reshape(n, ho, wo, 2, 2, nf)
    u = jnp.transpose(u, (0, 1, 3, 2, 4, 5)).reshape(n, 2 * ho, 2 * wo, nf)

    # ---- BatchNorm2d(nf) (training-mode batch stats) + channel concat ------
    count = float(n * (2 * ho) * (2 * wo))
    u_sum = u_sum4.reshape(4, nf).sum(axis=0)
    u_sq = u_sq4.reshape(4, nf).sum(axis=0)
    mean = u_sum / count
    var = jnp.maximum(u_sq / count - mean * mean, 0.0)
    scale = gamma.astype(jnp.float32) * lax.rsqrt(var + eps)
    shift = beta.astype(jnp.float32) - mean * scale

    out = bn_apply_concat(x.reshape(n * h * w, cin),
                          u.reshape(n * h * w, nf), scale, shift)
    out = out.reshape(n, h, w, cin + nf)
    # TODO(synk): keep the block NHWC end-to-end (across stacked UnetBlocks) to
    # drop this pure-layout NHWC->NCHW transpose.
    return jnp.transpose(out, (0, 3, 1, 2))


# ---------------------------------------------------------------------------
# Pure-JAX reference (lax convolutions, bf16 matmul inputs like the kernel)
# ---------------------------------------------------------------------------
def _reference(x, w_down, w_up, gamma, beta, eps=1e-5):
    bf = lambda t: t.astype(jnp.bfloat16)
    h = jnp.where(x > 0, x, 0.2 * x)
    h = lax.conv_general_dilated(
        bf(h), bf(w_down), (2, 2), ((1, 1), (1, 1)),
        dimension_numbers=("NCHW", "OIHW", "NCHW"),
        preferred_element_type=jnp.float32)
    h = jnp.maximum(h, 0.0)
    wt = jnp.transpose(w_up[:, :, ::-1, ::-1], (1, 0, 2, 3))
    h = lax.conv_general_dilated(
        bf(h), bf(wt), (1, 1), ((2, 2), (2, 2)), lhs_dilation=(2, 2),
        dimension_numbers=("NCHW", "OIHW", "NCHW"),
        preferred_element_type=jnp.float32)
    mean = h.mean(axis=(0, 2, 3), keepdims=True)
    var = ((h - mean) ** 2).mean(axis=(0, 2, 3), keepdims=True)
    h = (h - mean) / jnp.sqrt(var + eps) * gamma.reshape(1, -1, 1, 1) \
        + beta.reshape(1, -1, 1, 1)
    return jnp.concatenate([x, h], axis=1)


if __name__ == "__main__":
    nf, ni = 4, 8          # UnetBlock(nf=4, ni=8, innermost=True); input_c defaults to nf
    n, h, w = 2, 16, 16

    key = jax.random.PRNGKey(0)
    k1, k2, k3 = jax.random.split(key, 3)
    x = jax.random.normal(k1, (n, nf, h, w), jnp.float32)
    w_down = 0.1 * jax.random.normal(k2, (ni, nf, 4, 4), jnp.float32)  # Conv2d (O,I,kh,kw)
    w_up = 0.1 * jax.random.normal(k3, (ni, nf, 4, 4), jnp.float32)    # ConvTranspose2d (I,O,kh,kw)
    gamma = jnp.ones((nf,), jnp.float32)   # BatchNorm2d default affine init
    beta = jnp.zeros((nf,), jnp.float32)

    out = jax.jit(unet_block_innermost_forward)(x, w_down, w_up, gamma, beta)
    out = jax.block_until_ready(out)

    assert out.shape == (n, 2 * nf, h, w)
    ref = _reference(x, w_down, w_up, gamma, beta)
    np.testing.assert_allclose(np.asarray(out), np.asarray(ref),
                               atol=1e-2, rtol=1e-2)

    print("KERNEL_OK")
</pallas_src>

<mosaic_0001>
module attributes {stable_mosaic.version = 11 : i64} {
  func.func @_mm_single_kernel(%arg0: i32, %arg1: memref<128x64xf32, #tpu.memory_space<vmem>>, %arg2: memref<64x128xbf16, #tpu.memory_space<vmem>>, %arg3: memref<128x128xbf16, #tpu.memory_space<vmem>>) attributes {dimension_semantics = [#tpu.dimension_semantics<parallel>], iteration_bounds = array<i64: 1>, scalar_prefetch = 0 : i64, scratch_operands = 0 : i64, tpu.core_type = #tpu.core_type<tc>, window_params = [{transform_indices = @transform_0, window_bounds = array<i64: 128, 64>}, {pipeline_mode = #tpu.pipeline_mode<synchronous>, transform_indices = @transform_1, window_bounds = array<i64: 64, 128>}, {transform_indices = @transform_2, window_bounds = array<i64: 128, 128>}]} {
    %c0 = arith.constant 0 : index
    %c0_0 = arith.constant 0 : index
    %0 = vector.load %arg1[%c0, %c0_0] : memref<128x64xf32, #tpu.memory_space<vmem>>, vector<128x64xf32>
    %cst = arith.constant 0.000000e+00 : f32
    %1 = vector.broadcast %cst : f32 to vector<128x64xf32>
    %2 = arith.cmpf ogt, %0, %1 : vector<128x64xf32>
    %cst_1 = arith.constant 2.000000e-01 : f32
    %3 = vector.broadcast %cst_1 : f32 to vector<128x64xf32>
    %4 = arith.mulf %3, %0 : vector<128x64xf32>
    %5 = arith.select %2, %0, %4 : vector<128x64xi1>, vector<128x64xf32>
    %6 = arith.truncf %5 : vector<128x64xf32> to vector<128x64xbf16>
    %c0_2 = arith.constant 0 : index
    %c0_3 = arith.constant 0 : index
    %7 = vector.load %arg2[%c0_2, %c0_3] : memref<64x128xbf16, #tpu.memory_space<vmem>>, vector<64x128xbf16>
    %cst_4 = arith.constant dense<0.000000e+00> : vector<128x128xf32>
    %8 = tpu.matmul %6, %7, %cst_4 {dimension_numbers = #tpu.dot_dimension_numbers<[1], [0], [0], [1], [0, 0, 1, 1], [], []>} : vector<128x64xbf16>, vector<64x128xbf16>, vector<128x128xf32> -> vector<128x128xf32>
    %9 = arith.truncf %8 : vector<128x128xf32> to vector<128x128xbf16>
    %c0_5 = arith.constant 0 : index
    %c0_6 = arith.constant 0 : index
    %10 = vector.load %arg3[%c0_5, %c0_6] : memref<128x128xbf16, #tpu.memory_space<vmem>>, vector<128x128xbf16>
    tpu.vector_store %arg3[%c0_5, %c0_6], %9 {strides = array<i32>} : memref<128x128xbf16, #tpu.memory_space<vmem>>, vector<128x128xbf16>,
    return
  }
  func.func @transform_0(%arg0: i32) -> (i32, i32) {
    %c0_i32 = arith.constant 0 : i32
    %c0_i32_0 = arith.constant 0 : i32
    return %arg0, %c0_i32 : i32, i32
  }
  func.func @transform_1(%arg0: i32) -> (i32, i32) {
    %c0_i32 = arith.constant 0 : i32
    %c0_i32_0 = arith.constant 0 : i32
    %c0_i32_1 = arith.constant 0 : i32
    return %c0_i32, %c0_i32_0 : i32, i32
  }
  func.func @transform_2(%arg0: i32) -> (i32, i32) {
    %c0_i32 = arith.constant 0 : i32
    %c0_i32_0 = arith.constant 0 : i32
    return %arg0, %c0_i32 : i32, i32
  }
}

module attributes {stable_mosaic.version = 11 : i64} {
  func.func @_mm_single_kernel(%arg0: i32, %arg1: memref<128x80xbf16, #tpu.memory_space<vmem>>, %arg2: memref<80x128xbf16, #tpu.memory_space<vmem>>, %arg3: memref<128x128xf32, #tpu.memory_space<vmem>>, %arg4: memref<1x1x128xf32, #tpu.memory_space<vmem>>, %arg5: memref<1x1x128xf32, #tpu.memory_space<vmem>>) attributes {dimension_semantics = [#tpu.dimension_semantics<parallel>], iteration_bounds = array<i64: 1>, scalar_prefetch = 0 : i64, scratch_operands = 0 : i64, tpu.core_type = #tpu.core_type<tc>, window_params = [{transform_indices = @transform_0, window_bounds = array<i64: 128, 80>}, {pipeline_mode = #tpu.pipeline_mode<synchronous>, transform_indices = @transform_1, window_bounds = array<i64: 80, 128>}, {transform_indices = @transform_2, window_bounds = array<i64: 128, 128>}, {transform_indices = @transform_3, window_bounds = array<i64: 1, 1, 128>}, {transform_indices = @transform_4, window_bounds = array<i64: 1, 1, 128>}]} {
    %c0 = arith.constant 0 : index
    %c0_0 = arith.constant 0 : index
    %0 = vector.load %arg1[%c0, %c0_0] : memref<128x80xbf16, #tpu.memory_space<vmem>>, vector<128x80xbf16>
    %cst = arith.constant 0.000000e+00 : bf16
    %1 = vector.broadcast %cst : bf16 to vector<128x80xbf16>
    %2 = arith.maximumf %0, %1 : vector<128x80xbf16>
    %c0_1 = arith.constant 0 : index
    %c0_2 = arith.constant 0 : index
    %3 = vector.load %arg2[%c0_1, %c0_2] : memref<80x128xbf16, #tpu.memory_space<vmem>>, vector<80x128xbf16>
    %cst_3 = arith.constant dense<0.000000e+00> : vector<128x128xf32>
    %4 = tpu.matmul %2, %3, %cst_3 {dimension_numbers = #tpu.dot_dimension_numbers<[1], [0], [0], [1], [0, 0, 1, 1], [], []>} : vector<128x80xbf16>, vector<80x128xbf16>, vector<128x128xf32> -> vector<128x128xf32>
    %c0_4 = arith.constant 0 : index
    %c0_5 = arith.constant 0 : index
    %5 = vector.load %arg3[%c0_4, %c0_5] : memref<128x128xf32, #tpu.memory_space<vmem>>, vector<128x128xf32>
    tpu.vector_store %arg3[%c0_4, %c0_5], %4 {strides = array<i32>} : memref<128x128xf32, #tpu.memory_space<vmem>>, vector<128x128xf32>,
    %cst_6 = arith.constant dense<0.000000e+00> : vector<128xf32>
    %6 = vector.multi_reduction <add>, %4, %cst_6 [0] : vector<128x128xf32> to vector<128xf32>
    %7 = vector.shape_cast %6 : vector<128xf32> to vector<1x128xf32>
    %8 = vector.shape_cast %7 : vector<1x128xf32> to vector<1x1x128xf32>
    %c0_7 = arith.constant 0 : index
    %c0_8 = arith.constant 0 : index
    %c0_9 = arith.constant 0 : index
    %9 = vector.load %arg4[%c0_7, %c0_8, %c0_9] : memref<1x1x128xf32, #tpu.memory_space<vmem>>, vector<1x1x128xf32>
    tpu.vector_store %arg4[%c0_7, %c0_8, %c0_9], %8 {strides = array<i32>} : memref<1x1x128xf32, #tpu.memory_space<vmem>>, vector<1x1x128xf32>,
    %10 = arith.mulf %4, %4 : vector<128x128xf32>
    %cst_10 = arith.constant dense<0.000000e+00> : vector<128xf32>
    %11 = vector.multi_reduction <add>, %10, %cst_10 [0] : vector<128x128xf32> to vector<128xf32>
    %12 = vector.shape_cast %11 : vector<128xf32> to vector<1x128xf32>
    %13 = vector.shape_cast %12 : vector<1x128xf32> to vector<1x1x128xf32>
    %c0_11 = arith.constant 0 : index
    %c0_12 = arith.constant 0 : index
    %c0_13 = arith.constant 0 : index
    %14 = vector.load %arg5[%c0_11, %c0_12, %c0_13] : memref<1x1x128xf32, #tpu.memory_space<vmem>>, vector<1x1x128xf32>
    tpu.vector_store %arg5[%c0_11, %c0_12, %c0_13], %13 {strides = array<i32>} : memref<1x1x128xf32, #tpu.memory_space<vmem>>, vector<1x1x128xf32>,
    return
  }
  func.func @transform_0(%arg0: i32) -> (i32, i32) {
    %c0_i32 = arith.constant 0 : i32
    %c0_i32_0 = arith.constant 0 : i32
    return %arg0, %c0_i32 : i32, i32
  }
  func.func @transform_1(%arg0: i32) -> (i32, i32) {
    %c0_i32 = arith.constant 0 : i32
    %c0_i32_0 = arith.constant 0 : i32
    %c0_i32_1 = arith.constant 0 : i32
    return %c0_i32, %c0_i32_0 : i32, i32
  }
  func.func @transform_2(%arg0: i32) -> (i32, i32) {
    %c0_i32 = arith.constant 0 : i32
    %c0_i32_0 = arith.constant 0 : i32
    return %arg0, %c0_i32 : i32, i32
  }
  func.func @transform_3(%arg0: i32) -> (i32, i32, i32) {
    %c0_i32 = arith.constant 0 : i32
    %c0_i32_0 = arith.constant 0 : i32
    %c0_i32_1 = arith.constant 0 : i32
    return %arg0, %c0_i32, %c0_i32_0 : i32, i32, i32
  }
  func.func @transform_4(%arg0: i32) -> (i32, i32, i32) {
    %c0_i32 = arith.constant 0 : i32
    %c0_i32_0 = arith.constant 0 : i32
    %c0_i32_1 = arith.constant 0 : i32
    return %arg0, %c0_i32, %c0_i32_0 : i32, i32, i32
  }
}

module attributes {stable_mosaic.version = 11 : i64} {
  func.func @_bn_apply_concat_kernel(%arg0: i32, %arg1: memref<512x4xf32, #tpu.memory_space<vmem>>, %arg2: memref<512x4xf32, #tpu.memory_space<vmem>>, %arg3: memref<1x4xf32, #tpu.memory_space<vmem>>, %arg4: memref<1x4xf32, #tpu.memory_space<vmem>>, %arg5: memref<512x8xf32, #tpu.memory_space<vmem>>) attributes {dimension_semantics = [#tpu.dimension_semantics<parallel>], iteration_bounds = array<i64: 1>, scalar_prefetch = 0 : i64, scratch_operands = 0 : i64, tpu.core_type = #tpu.core_type<tc>, window_params = [{transform_indices = @transform_0, window_bounds = array<i64: 512, 4>}, {transform_indices = @transform_1, window_bounds = array<i64: 512, 4>}, {pipeline_mode = #tpu.pipeline_mode<synchronous>, transform_indices = @transform_2, window_bounds = array<i64: 1, 4>}, {pipeline_mode = #tpu.pipeline_mode<synchronous>, transform_indices = @transform_3, window_bounds = array<i64: 1, 4>}, {transform_indices = @transform_4, window_bounds = array<i64: 512, 8>}]} {
    %c0 = arith.constant 0 : index
    %c0_0 = arith.constant 0 : index
    %0 = vector.load %arg1[%c0, %c0_0] : memref<512x4xf32, #tpu.memory_space<vmem>>, vector<512x4xf32>
    %c0_1 = arith.constant 0 : index
    %c0_2 = arith.constant 0 : index
    %1 = vector.load %arg5[%c0_1, %c0_2] : memref<512x8xf32, #tpu.memory_space<vmem>>, vector<512x4xf32>
    tpu.vector_store %arg5[%c0_1, %c0_2], %0 {strides = array<i32>} : memref<512x8xf32, #tpu.memory_space<vmem>>, vector<512x4xf32>,
    %c0_3 = arith.constant 0 : index
    %c0_4 = arith.constant 0 : index
    %2 = vector.load %arg2[%c0_3, %c0_4] : memref<512x4xf32, #tpu.memory_space<vmem>>, vector<512x4xf32>
    %c0_5 = arith.constant 0 : index
    %c0_6 = arith.constant 0 : index
    %3 = vector.load %arg3[%c0_5, %c0_6] : memref<1x4xf32, #tpu.memory_space<vmem>>, vector<1x4xf32>
    %4 = vector.broadcast %3 : vector<1x4xf32> to vector<512x4xf32>
    %5 = arith.mulf %2, %4 : vector<512x4xf32>
    %c0_7 = arith.constant 0 : index
    %c0_8 = arith.constant 0 : index
    %6 = vector.load %arg4[%c0_7, %c0_8] : memref<1x4xf32, #tpu.memory_space<vmem>>, vector<1x4xf32>
    %7 = vector.broadcast %6 : vector<1x4xf32> to vector<512x4xf32>
    %8 = arith.addf %5, %7 : vector<512x4xf32>
    %c0_9 = arith.constant 0 : index
    %c4 = arith.constant 4 : index
    %9 = vector.load %arg5[%c0_9, %c4] : memref<512x8xf32, #tpu.memory_space<vmem>>, vector<512x4xf32>
    tpu.vector_store %arg5[%c0_9, %c4], %8 {strides = array<i32>} : memref<512x8xf32, #tpu.memory_space<vmem>>, vector<512x4xf32>,
    return
  }
  func.func @transform_0(%arg0: i32) -> (i32, i32) {
    %c0_i32 = arith.constant 0 : i32
    %c0_i32_0 = arith.constant 0 : i32
    return %arg0, %c0_i32 : i32, i32
  }
  func.func @transform_1(%arg0: i32) -> (i32, i32) {
    %c0_i32 = arith.constant 0 : i32
    %c0_i32_0 = arith.constant 0 : i32
    return %arg0, %c0_i32 : i32, i32
  }
  func.func @transform_2(%arg0: i32) -> (i32, i32) {
    %c0_i32 = arith.constant 0 : i32
    %c0_i32_0 = arith.constant 0 : i32
    %c0_i32_1 = arith.constant 0 : i32
    return %c0_i32, %c0_i32_0 : i32, i32
  }
  func.func @transform_3(%arg0: i32) -> (i32, i32) {
    %c0_i32 = arith.constant 0 : i32
    %c0_i32_0 = arith.constant 0 : i32
    %c0_i32_1 = arith.constant 0 : i32
    return %c0_i32, %c0_i32_0 : i32, i32
  }
  func.func @transform_4(%arg0: i32) -> (i32, i32) {
    %c0_i32 = arith.constant 0 : i32
    %c0_i32_0 = arith.constant 0 : i32
    return %arg0, %c0_i32 : i32, i32
  }
}

</mosaic_0001>

<bundles_post_ra>
// kernel: unet_block_innermost_forward.3
= control target key start
LH: loop header
LB: loop body
LE: loop exit
PB: predicated region body
PF: predicated region fallthrough
CT: control target
= control target key end

     0   :  { %vm116_vm0 = vcmask 523264   ;;  %s573_s1 = inlined_call_operand.vmem [shape: bf16[64,128], index: 1, kind: input, shape index: {}]   ;;  %s574_s0 = inlined_call_operand.vmem [shape: f32[128,64], index: 0, kind: input, shape index: {}]   ;;  %s575_s2 = inlined_call_operand.vmem [shape: bf16[128,128], index: 2, kind: output, shape index: {}]  }
   0x1   :  { %v457_v0 = vld [vmem:[%s573_s1 + $0x18] sm:$0xff]   ;;  %v458_v1 = vld [vmem:[%s573_s1 + $0x10] sm:$0xff]   ;;  %v459_v2 = vld [vmem:[%s573_s1 + $0x8] sm:$0xff]  }
   0x2   :  { %425 = vmatprep.subr.bf16.mxu0 %v457_v0  ;;  %449 = vmatprep.subr.bf16.mxu1 %v457_v0  ;;  %v12_v3 = vld [vmem:[%s574_s0] sm:$0xff]  ;;  %v13_v4 = vld [vmem:[%s574_s0 + $0x8] sm:$0xff]  ;;  %v14_v10 = vld [vmem:[%s574_s0 + $0x10] sm:$0xff] }
   0x3   :  { %426 = vmatpush3.bf16.msra.mxu0 %v457_v0  ;;  %453 = vmatpush3.bf16.msra.mxu1 %v457_v0  ;;  %v20_v5 = vld [vmem:[%s574_s0 + $0x40] sm:$0xff]  ;;  %vm28_vm1 = vcmp.gt.f32.partialorder %v12_v3, 0.0  ;;  %vm29_vm2 = vcmp.gt.f32.partialorder %v13_v4, 0.0  ;;  %v44_v6 = vmul.f32 0.2, %v12_v3  ;;  %v21_v8 = vld [vmem:[%s574_s0 + $0x48] sm:$0xff] }
   0x4   :  { %427 = vmatprep.subr.bf16.mxu0 %v458_v1  ;;  %450 = vmatprep.subr.bf16.mxu1 %v458_v1  ;;  %v45_v7 = vmul.f32 0.2, %v13_v4  ;;  %vm36_vm3 = vcmp.gt.f32.partialorder %v20_v5, 0.0  ;;  %v52_v9 = vmul.f32 0.2, %v20_v5  ;;  %v15_v11 = vld [vmem:[%s574_s0 + $0x18] sm:$0xff] }
   0x5   :  { %v60_v12 = vsel %vm28_vm1, %v12_v3, %v44_v6  ;;  %vm37_vm4 = vcmp.gt.f32.partialorder %v21_v8, 0.0  ;;  %v53_v14 = vmul.f32 0.2, %v21_v8  ;;  %v22_v15 = vld [vmem:[%s574_s0 + $0x50] sm:$0xff]  ;;  %v23_v16 = vld [vmem:[%s574_s0 + $0x58] sm:$0xff]  ;;  %v460_v17 = vld [vmem:[%s573_s1] sm:$0xff]  }
   0x6   :  { %v61_v13 = vsel %vm29_vm2, %v13_v4, %v45_v7  ;;  %v68_v19 = vsel %vm36_vm3, %v20_v5, %v52_v9  ;;  %vm30_vm5 = vcmp.gt.f32.partialorder %v14_v10, 0.0  ;;  %vm31_vm6 = vcmp.gt.f32.partialorder %v15_v11, 0.0  ;;  %v16_v20 = vld [vmem:[%s574_s0 + $0x20] sm:$0xff]  ;;  %v17_v21 = vld [vmem:[%s574_s0 + $0x28] sm:$0xff]  ;;  %v18_v35 = vld [vmem:[%s574_s0 + $0x30] sm:$0xff] }
   0x7   :  { %428 = vmatpush3.bf16.msra.mxu0 %v458_v1  ;;  %454 = vmatpush3.bf16.msra.mxu1 %v458_v1  ;;  %v76_v18 = vpack.c.bf16 %v61_v13, %v60_v12  ;;  %v69_v22 = vsel %vm37_vm4, %v21_v8, %v53_v14  ;;  %v46_v23 = vmul.f32 0.2, %v14_v10  ;;  %v47_v24 = vmul.f32 0.2, %v15_v11  ;;  %v24_v25 = vld [vmem:[%s574_s0 + $0x60] sm:$0xff]  ;;  %v25_v29 = vld [vmem:[%s574_s0 + $0x68] sm:$0xff] }
   0x8   :  { %429 = vmatprep.subr.bf16.mxu0 %v459_v2  ;;  %451 = vmatprep.subr.bf16.mxu1 %v459_v2  ;;  %vm38_vm7 = vcmp.gt.f32.partialorder %v22_v15, 0.0  ;;  %v80_v26 = vpack.c.bf16 %v69_v22, %v68_v19  ;;  %vm39_vm8 = vcmp.gt.f32.partialorder %v23_v16, 0.0  ;;  %v54_v27 = vmul.f32 0.2, %v22_v15  ;;  %v19_v36 = vld [vmem:[%s574_s0 + $0x38] sm:$0xff]  ;;  %v26_v43 = vld [vmem:[%s574_s0 + $0x70] sm:$0xff] }
   0x9   :  { %433 = vmatprep.mubr.msk.bf16.mxu0 %vm116_vm0, %v76_v18  ;;  %v55_v28 = vmul.f32 0.2, %v23_v16  ;;  %v62_v30 = vsel %vm30_vm5, %v14_v10, %v46_v23  ;;  %v63_v31 = vsel %vm31_vm6, %v15_v11, %v47_v24  ;;  %vm32_vm9 = vcmp.gt.f32.partialorder %v16_v20, 0.0  ;;  %v27_v44 = vld [vmem:[%s574_s0 + $0x78] sm:$0xff] }
   0xa   :  { %v70_v32 = vsel %vm38_vm7, %v22_v15, %v54_v27  ;;  %vm33_vm10 = vcmp.gt.f32.partialorder %v17_v21, 0.0  ;;  %v48_v34 = vmul.f32 0.2, %v16_v20  ;;  %441 = vmatprep.mubr.msk.bf16.mxu1 %vm116_vm0, %v80_v26  ;;  %v77_v37 = vpack.c.bf16 %v63_v31, %v62_v30 }
   0xb   :  { %430 = vmatpush3.bf16.msra.mxu0 %v459_v2  ;;  %455 = vmatpush3.bf16.msra.mxu1 %v459_v2  ;;  %v71_v33 = vsel %vm39_vm8, %v23_v16, %v55_v28  ;;  %v49_v38 = vmul.f32 0.2, %v17_v21  ;;  %vm40_vm11 = vcmp.gt.f32.partialorder %v24_v25, 0.0  ;;  %vm41_vm12 = vcmp.gt.f32.partialorder %v25_v29, 0.0 }
   0xc   :  { %431 = vmatprep.subr.bf16.mxu0 %v460_v17  ;;  %452 = vmatprep.subr.bf16.mxu1 %v460_v17  ;;  %v81_v39 = vpack.c.bf16 %v71_v33, %v70_v32  ;;  %v64_v40 = vsel %vm32_vm9, %v16_v20, %v48_v34  ;;  %v56_v41 = vmul.f32 0.2, %v24_v25  ;;  %v57_v42 = vmul.f32 0.2, %v25_v29 }
   0xd   :  { %v65_v45 = vsel %vm33_vm10, %v17_v21, %v49_v38  ;;  %vm34_vm13 = vcmp.gt.f32.partialorder %v18_v35, 0.0  ;;  %v50_v46 = vmul.f32 0.2, %v18_v35  ;;  %v51_v47 = vmul.f32 0.2, %v19_v36 }
   0xe   :  { %v78_v48 = vpack.c.bf16 %v65_v45, %v64_v40  ;;  %v72_v49 = vsel %vm40_vm11, %v24_v25, %v56_v41  ;;  %v73_v50 = vsel %vm41_vm12, %v25_v29, %v57_v42  ;;  %vm35_vm14 = vcmp.gt.f32.partialorder %v19_v36, 0.0 }
   0xf   :  { %432 = vmatpush3.bf16.msra.mxu0 %v460_v17  ;;  %456 = vmatpush3.bf16.msra.mxu1 %v460_v17  ;;  %v82_v51 = vpack.c.bf16 %v73_v50, %v72_v49  ;;  %vm42_vm15 = vcmp.gt.f32.partialorder %v26_v43, 0.0  ;;  %vm43_vm1 = vcmp.gt.f32.partialorder %v27_v44, 0.0  ;;  %v58_v52 = vmul.f32 0.2, %v26_v43 }
  0x10   :  { %v59_v53 = vmul.f32 0.2, %v27_v44  ;;  %v66_v54 = vsel %vm34_vm13, %v18_v35, %v50_v46  ;;  %v67_v55 = vsel %vm35_vm14, %v19_v36, %v51_v47 }
  0x11   :  { %v74_v56 = vsel %vm42_vm15, %v26_v43, %v58_v52  ;;  %v79_v58 = vpack.c.bf16 %v67_v55, %v66_v54 }
  0x12   :  { %434 = vmatmul.mubr.msk.bf16.vlgmr.msra.gmra.mxu0 %vm116_vm0, %v77_v37  ;;  %442 = vmatmul.mubr.msk.bf16.vlgmr.msra.gmra.mxu1 %vm116_vm0, %v81_v39  ;;  %v75_v57 = vsel %vm43_vm1, %v27_v44, %v59_v53 }
  0x13   :  { %437 = vmatprep.mubr.msk.bf16.mxu0 %vm116_vm0, %v78_v48  ;;  %445 = vmatprep.mubr.msk.bf16.mxu1 %vm116_vm0, %v82_v51  ;;  %v83_v59 = vpack.c.bf16 %v75_v57, %v74_v56 }
  0x1a   :  { %438 = vmatmul.mubr.msk.bf16.gmra.mxu0 %vm116_vm0, %v79_v58  ;;  %446 = vmatmul.mubr.msk.bf16.gmra.mxu1 %vm116_vm0, %v83_v59 }
  0xd2   :  { %v435_v60 = vpop.f32.mrf.mxu0  ;;  %v443_v61 = vpop.f32.mrf.mxu1 }
  0xd4   :  { %v175_v62 = vpop.f32.mrf.mxu0  ;;  %v207_v63 = vpop.f32.mrf.mxu1 }
  0xd6   :  { %v436_v0 = vpop.f32.mrf.mxu0  ;;  %v444_v1 = vpop.f32.mrf.mxu1 }
  0xd7   :  { %v374_v2 = vpack.c.bf16 %v436_v0, %v435_v60  ;;  %v394_v3 = vpack.c.bf16 %v444_v1, %v443_v61 }
  0xd8   :  { %v178_v4 = vpop.f32.mrf.mxu0  ;;  %v210_v5 = vpop.f32.mrf.mxu1 }
  0xd9   :  { %406 = vst [vmem:[%s575_s2 + $0x8] sm:$0xff] %v374_v2   ;;  %410 = vst [vmem:[%s575_s2 + $0x28] sm:$0xff] %v394_v3   ;;  %v369_v6 = vpack.c.bf16 %v178_v4, %v175_v62  ;;  %v389_v7 = vpack.c.bf16 %v210_v5, %v207_v63 }
  0xda   :  { %v439_v8 = vpop.f32.mrf.mxu0  ;;  %v447_v9 = vpop.f32.mrf.mxu1 }
  0xdb   :  { %370 = vst [vmem:[%s575_s2] sm:$0xff] %v369_v6   ;;  %409 = vst [vmem:[%s575_s2 + $0x20] sm:$0xff] %v389_v7  }
  0xdc   :  { %v191_v10 = vpop.f32.mrf.mxu0  ;;  %v223_v11 = vpop.f32.mrf.mxu1 }
  0xde   :  { %v440_v12 = vpop.f32.mrf.mxu0  ;;  %v448_v13 = vpop.f32.mrf.mxu1 }
  0xdf   :  { %v384_v14 = vpack.c.bf16 %v440_v12, %v439_v8  ;;  %v404_v15 = vpack.c.bf16 %v448_v13, %v447_v9 }
  0xe0   :  { %v194_v16 = vpop.f32.mrf.mxu0  ;;  %v226_v17 = vpop.f32.mrf.mxu1 }
  0xe1   :  { %408 = vst [vmem:[%s575_s2 + $0x18] sm:$0xff] %v384_v14   ;;  %412 = vst [vmem:[%s575_s2 + $0x38] sm:$0xff] %v404_v15   ;;  %v379_v18 = vpack.c.bf16 %v194_v16, %v191_v10  ;;  %v399_v19 = vpack.c.bf16 %v226_v17, %v223_v11 }
  0xe3   :  { %407 = vst [vmem:[%s575_s2 + $0x10] sm:$0xff] %v379_v18   ;;  %411 = vst [vmem:[%s575_s2 + $0x30] sm:$0xff] %v399_v19  }

// kernel: unet_block_innermost_forward.4
= control target key start
LH: loop header
LB: loop body
LE: loop exit
PB: predicated region body
PF: predicated region fallthrough
CT: control target
= control target key end

     0   :  { %v413_v5 = vmov 0   ;;  %vm127_vm0 = vcmask 654336   ;;  %s564_s1 = inlined_call_operand.vmem [shape: bf16[80,128], index: 1, kind: input, shape index: {}]   ;;  %s565_s0 = inlined_call_operand.vmem [shape: bf16[128,80], index: 0, kind: input, shape index: {}]   ;;  %s566_s2 = inlined_call_operand.vmem [shape: f32[128,128], index: 2, kind: output, shape index: {0}]   ;;  %s567_s3 = inlined_call_operand.vmem [shape: f32[1,1,128], index: 3, kind: output, shape index: {1}]   ;;  %s568_s4 = inlined_call_operand.vmem [shape: f32[1,1,128], index: 4, kind: output, shape index: {2}]  }
   0x1   :  { %v408_v0 = vld [vmem:[%s564_s1 + $0x20] sm:$0xff]   ;;  %v409_v1 = vld [vmem:[%s564_s1 + $0x18] sm:$0xff]   ;;  %v410_v2 = vld [vmem:[%s564_s1 + $0x10] sm:$0xff]  }
   0x2   :  { %371 = vmatprep.subr.bf16.mxu0 %v408_v0  ;;  %397 = vmatprep.subr.bf16.mxu1 %v408_v0  ;;  %v15_v3 = vld [vmem:[%s565_s0] sm:$0xf]  ;;  %v16_v4 = vld [vmem:[%s565_s0 + $0x4] sm:$0xf]  ;;  %v411_v9 = vld [vmem:[%s564_s1 + $0x8] sm:$0xff]  }
   0x3   :  { %372 = vmatpush3.bf16.msra.mxu0 %v408_v0  ;;  %402 = vmatpush3.bf16.msra.mxu1 %v408_v0  ;;  %v31_v6 = vmax.bf16 %v413_v5, %v15_v3  ;;  %v32_v7 = vmax.bf16 %v413_v5, %v16_v4  ;;  %v23_v8 = vld [vmem:[%s565_s0 + $0x20] sm:$0xf]  ;;  %v24_v11 = vld [vmem:[%s565_s0 + $0x24] sm:$0xf]  ;;  %v17_v15 = vld [vmem:[%s565_s0 + $0x8] sm:$0xf] }
   0x4   :  { %373 = vmatprep.subr.bf16.mxu0 %v409_v1  ;;  %398 = vmatprep.subr.bf16.mxu1 %v409_v1  ;;  %v39_v12 = vmax.bf16 %v413_v5, %v23_v8  ;;  %v40_v13 = vmax.bf16 %v413_v5, %v24_v11  ;;  %v412_v14 = vld [vmem:[%s564_s1] sm:$0xff]   ;;  %v18_v16 = vld [vmem:[%s565_s0 + $0xc] sm:$0xf]  ;;  %v19_v17 = vld [vmem:[%s565_s0 + $0x10] sm:$0xf]  ;;  %v33_v24 = vmax.bf16 %v413_v5, %v17_v15 }
   0x5   :  { %v337_v10 = vcombine.low %v31_v6, %v32_v7  ;;  %v25_v19 = vld [vmem:[%s565_s0 + $0x28] sm:$0xf]  ;;  %v26_v20 = vld [vmem:[%s565_s0 + $0x2c] sm:$0xf]  ;;  %v20_v21 = vld [vmem:[%s565_s0 + $0x14] sm:$0xf]  ;;  %v34_v25 = vmax.bf16 %v413_v5, %v18_v16  ;;  %v35_v26 = vmax.bf16 %v413_v5, %v19_v17 }
   0x6   :  { %v341_v18 = vcombine.low %v39_v12, %v40_v13  ;;  %v27_v22 = vld [vmem:[%s565_s0 + $0x30] sm:$0xf]  ;;  %v28_v23 = vld [vmem:[%s565_s0 + $0x34] sm:$0xf]  ;;  %v41_v27 = vmax.bf16 %v413_v5, %v25_v19  ;;  %v42_v28 = vmax.bf16 %v413_v5, %v26_v20  ;;  %v36_v29 = vmax.bf16 %v413_v5, %v20_v21  ;;  %v21_v33 = vld [vmem:[%s565_s0 + $0x18] sm:$0xf] }
   0x7   :  { %374 = vmatpush3.bf16.msra.mxu0 %v409_v1  ;;  %403 = vmatpush3.bf16.msra.mxu1 %v409_v1  ;;  %v43_v30 = vmax.bf16 %v413_v5, %v27_v22  ;;  %v44_v31 = vmax.bf16 %v413_v5, %v28_v23  ;;  %v338_v32 = vcombine.low %v33_v24, %v34_v25  ;;  %v22_v36 = vld [vmem:[%s565_s0 + $0x1c] sm:$0xf]  ;;  %v29_v38 = vld [vmem:[%s565_s0 + $0x38] sm:$0xf] }
   0x8   :  { %375 = vmatprep.subr.bf16.mxu0 %v410_v2  ;;  %399 = vmatprep.subr.bf16.mxu1 %v410_v2  ;;  %v342_v34 = vcombine.low %v41_v27, %v42_v28  ;;  %v339_v35 = vcombine.low %v35_v26, %v36_v29  ;;  %v30_v39 = vld [vmem:[%s565_s0 + $0x3c] sm:$0xf]  ;;  %v37_v40 = vmax.bf16 %v413_v5, %v21_v33 }
   0x9   :  { %381 = vmatprep.mubr.msk.bf16.mxu0 %vm127_vm0, %v337_v10  ;;  %389 = vmatprep.mubr.msk.bf16.mxu1 %vm127_vm0, %v341_v18  ;;  %v343_v37 = vcombine.low %v43_v30, %v44_v31  ;;  %v38_v41 = vmax.bf16 %v413_v5, %v22_v36  ;;  %v45_v42 = vmax.bf16 %v413_v5, %v29_v38 }
   0xa   :  { %v46_v43 = vmax.bf16 %v413_v5, %v30_v39 }
   0xb   :  { %376 = vmatpush3.bf16.msra.mxu0 %v410_v2  ;;  %404 = vmatpush3.bf16.msra.mxu1 %v410_v2  ;;  %v340_v44 = vcombine.low %v37_v40, %v38_v41 }
   0xc   :  { %377 = vmatprep.subr.bf16.mxu0 %v411_v9  ;;  %400 = vmatprep.subr.bf16.mxu1 %v411_v9  ;;  %v344_v45 = vcombine.low %v45_v42, %v46_v43 }
   0xf   :  { %378 = vmatpush3.bf16.msra.mxu0 %v411_v9  ;;  %405 = vmatpush3.bf16.msra.mxu1 %v411_v9 }
  0x10   :  { %379 = vmatprep.subr.bf16.mxu0 %v412_v14  ;;  %401 = vmatprep.subr.bf16.mxu1 %v412_v14 }
  0x13   :  { %380 = vmatpush3.bf16.msra.mxu0 %v412_v14  ;;  %406 = vmatpush3.bf16.msra.mxu1 %v412_v14 }
  0x16   :  { %382 = vmatmul.mubr.msk.bf16.vlgmr.msra.gmra.mxu0 %vm127_vm0, %v338_v32  ;;  %390 = vmatmul.mubr.msk.bf16.vlgmr.msra.gmra.mxu1 %vm127_vm0, %v342_v34 }
  0x17   :  { %385 = vmatprep.mubr.msk.bf16.mxu0 %vm127_vm0, %v339_v35  ;;  %393 = vmatprep.mubr.msk.bf16.mxu1 %vm127_vm0, %v343_v37 }
  0x1e   :  { %386 = vmatmul.mubr.msk.bf16.gmra.mxu0 %vm127_vm0, %v340_v44  ;;  %394 = vmatmul.mubr.msk.bf16.gmra.mxu1 %vm127_vm0, %v344_v45 }
  0xd6   :  { %v383_v46 = vpop.f32.mrf.mxu0  ;;  %v391_v47 = vpop.f32.mrf.mxu1 }
  0xd7   :  { %251 = vst [vmem:[%s566_s2 + $0x10] sm:$0xff] %v383_v46  ;;  %259 = vst [vmem:[%s566_s2 + $0x50] sm:$0xff] %v391_v47  ;;  %v289_v59 = vmul.f32 %v383_v46, %v383_v46  ;;  %v297_v25 = vmul.f32 %v391_v47, %v391_v47 }
  0xd8   :  { %v186_v48 = vpop.f32.mrf.mxu0  ;;  %v218_v49 = vpop.f32.mrf.mxu1 }
  0xd9   :  { %249 = vst [vmem:[%s566_s2] sm:$0xff] %v186_v48  ;;  %257 = vst [vmem:[%s566_s2 + $0x40] sm:$0xff] %v218_v49  ;;  %v287_v54 = vmul.f32 %v186_v48, %v186_v48  ;;  %v295_v19 = vmul.f32 %v218_v49, %v218_v49 }
  0xda   :  { %v384_v50 = vpop.f32.mrf.mxu0  ;;  %v392_v51 = vpop.f32.mrf.mxu1 }
  0xdb   :  { %252 = vst [vmem:[%s566_s2 + $0x18] sm:$0xff] %v384_v50  ;;  %260 = vst [vmem:[%s566_s2 + $0x58] sm:$0xff] %v392_v51  ;;  %v290_v0 = vmul.f32 %v384_v50, %v384_v50  ;;  %v298_v28 = vmul.f32 %v392_v51, %v392_v51 }
  0xdc   :  { %v189_v52 = vpop.f32.mrf.mxu0  ;;  %v221_v53 = vpop.f32.mrf.mxu1 }
  0xdd   :  { %250 = vst [vmem:[%s566_s2 + $0x8] sm:$0xff] %v189_v52  ;;  %v265_v55 = vadd.f32 %v189_v52, %v186_v48  ;;  %v288_v56 = vmul.f32 %v189_v52, %v189_v52  ;;  %258 = vst [vmem:[%s566_s2 + $0x48] sm:$0xff] %v221_v53  ;;  %v296_v23 = vmul.f32 %v221_v53, %v221_v53 }
  0xde   :  { %v387_v57 = vpop.f32.mrf.mxu0  ;;  %v395_v58 = vpop.f32.mrf.mxu1 }
  0xdf   :  { %v266_v60 = vadd.f32 %v383_v46, %v265_v55  ;;  %v303_v61 = vadd.f32 %v288_v56, %v287_v54  ;;  %255 = vst [vmem:[%s566_s2 + $0x30] sm:$0xff] %v387_v57  ;;  %263 = vst [vmem:[%s566_s2 + $0x70] sm:$0xff] %v395_v58  ;;  %v293_v13 = vmul.f32 %v387_v57, %v387_v57 }
  0xe0   :  { %v202_v62 = vpop.f32.mrf.mxu0  ;;  %v234_v63 = vpop.f32.mrf.mxu1  ;;  %v301_v37 = vmul.f32 %v395_v58, %v395_v58 }
  0xe1   :  { %v304_v1 = vadd.f32 %v303_v61, %v289_v59  ;;  %253 = vst [vmem:[%s566_s2 + $0x20] sm:$0xff] %v202_v62  ;;  %v267_v2 = vadd.f32 %v384_v50, %v266_v60  ;;  %261 = vst [vmem:[%s566_s2 + $0x60] sm:$0xff] %v234_v63  ;;  %v291_v6 = vmul.f32 %v202_v62, %v202_v62 }
  0xe2   :  { %v388_v3 = vpop.f32.mrf.mxu0  ;;  %v396_v4 = vpop.f32.mrf.mxu1  ;;  %v299_v32 = vmul.f32 %v234_v63, %v234_v63 }
  0xe3   :  { %v268_v5 = vadd.f32 %v267_v2, %v202_v62  ;;  %v305_v7 = vadd.f32 %v304_v1, %v290_v0  ;;  %256 = vst [vmem:[%s566_s2 + $0x38] sm:$0xff] %v388_v3  ;;  %264 = vst [vmem:[%s566_s2 + $0x78] sm:$0xff] %v396_v4  ;;  %v294_v16 = vmul.f32 %v388_v3, %v388_v3 }
  0xe4   :  { %v205_v8 = vpop.f32.mrf.mxu0  ;;  %v237_v9 = vpop.f32.mrf.mxu1  ;;  %v302_v40 = vmul.f32 %v396_v4, %v396_v4 }
  0xe5   :  { %v306_v10 = vadd.f32 %v305_v7, %v291_v6  ;;  %254 = vst [vmem:[%s566_s2 + $0x28] sm:$0xff] %v205_v8  ;;  %v269_v11 = vadd.f32 %v268_v5, %v205_v8  ;;  %v292_v12 = vmul.f32 %v205_v8, %v205_v8  ;;  %262 = vst [vmem:[%s566_s2 + $0x68] sm:$0xff] %v237_v9 }
  0xe6   :  { %v300_v36 = vmul.f32 %v237_v9, %v237_v9 }
  0xe7   :  { %v270_v14 = vadd.f32 %v387_v57, %v269_v11  ;;  %v307_v15 = vadd.f32 %v306_v10, %v292_v12 }
  0xe9   :  { %v271_v17 = vadd.f32 %v388_v3, %v270_v14  ;;  %v308_v18 = vadd.f32 %v307_v15, %v293_v13 }
  0xeb   :  { %v309_v20 = vadd.f32 %v308_v18, %v294_v16  ;;  %v272_v21 = vadd.f32 %v271_v17, %v218_v49 }
  0xed   :  { %v273_v22 = vadd.f32 %v272_v21, %v221_v53  ;;  %v310_v24 = vadd.f32 %v309_v20, %v295_v19 }
  0xef   :  { %v274_v26 = vadd.f32 %v391_v47, %v273_v22  ;;  %v311_v27 = vadd.f32 %v310_v24, %v296_v23 }
  0xf1   :  { %v312_v29 = vadd.f32 %v311_v27, %v297_v25  ;;  %v275_v30 = vadd.f32 %v392_v51, %v274_v26 }
  0xf3   :  { %v276_v31 = vadd.f32 %v275_v30, %v234_v63  ;;  %v313_v33 = vadd.f32 %v312_v29, %v298_v28 }
  0xf5   :  { %v314_v34 = vadd.f32 %v313_v33, %v299_v32  ;;  %v277_v35 = vadd.f32 %v276_v31, %v237_v9 }
  0xf7   :  { %v278_v38 = vadd.f32 %v395_v58, %v277_v35  ;;  %v315_v39 = vadd.f32 %v314_v34, %v300_v36 }
  0xf9   :  { %v279_v41 = vadd.f32 %v396_v4, %v278_v38  ;;  %v316_v42 = vadd.f32 %v315_v39, %v301_v37 }
  0xfb   :  { %v280_v43 = vrot.slane %v279_v41, 4  ;;  %v317_v44 = vadd.f32 %v316_v42, %v302_v40 }
  0xfd   :  { %v281_v45 = vadd.f32 %v280_v43, %v279_v41  ;;  %v318_v46 = vrot.slane %v317_v44, 4 }
  0xff   :  { %v282_v47 = vrot.slane %v281_v45, 2  ;;  %v319_v48 = vadd.f32 %v318_v46, %v317_v44 }
 0x101   :  { %v283_v49 = vadd.f32 %v282_v47, %v281_v45  ;;  %v320_v50 = vrot.slane %v319_v48, 2 }
 0x103   :  { %v284_v51 = vrot.slane %v283_v49, 1  ;;  %v321_v52 = vadd.f32 %v320_v50, %v319_v48 }
 0x105   :  { %v285_v53 = vadd.f32 %v284_v51, %v283_v49  ;;  %v322_v54 = vrot.slane %v321_v52, 1 }
 0x107   :  { %286 = vst [vmem:[%s567_s3] sm:$0x1] %v285_v53  ;;  %v323_v55 = vadd.f32 %v322_v54, %v321_v52 }
 0x109   :  { %324 = vst [vmem:[%s568_s4] sm:$0x1] %v323_v55 }

// kernel: unet_block_innermost_forward.5
= control target key start
LH: loop header
LB: loop body
LE: loop exit
PB: predicated region body
PF: predicated region fallthrough
CT: control target
= control target key end

     0   :  { %s680_s29 = smov 4   ;;  %vm81_vm0 = vcmask 31744   ;;  %vm608_vm1 = vcmask 64544   ;;  %s1927_s1 = inlined_call_operand.vmem [shape: f32[512,4], index: 1, kind: input, shape index: {}]   ;;  %s1928_s2 = inlined_call_operand.vmem [shape: f32[1,4], index: 2, kind: input, shape index: {}]   ;;  %s1929_s3 = inlined_call_operand.vmem [shape: f32[1,4], index: 3, kind: input, shape index: {}]   ;;  %s1930_s0 = inlined_call_operand.vmem [shape: f32[512,4], index: 0, kind: input, shape index: {}]   ;;  %s1931_s4 = inlined_call_operand.vmem [shape: f32[512,8], index: 4, kind: output, shape index: {}]  }
   0x1   :  { %v148_v0 = vld [vmem:[%s1927_s1 + $0x10] sm:$0xff]  ;;  %v712_v1 = vld [vmem:[%s1928_s2] ss:$0 sm:$0xff]  ;;  %v149_v5 = vld [vmem:[%s1927_s1 + $0x18] sm:$0xff] }
   0x2   :  { %v717_v2 = vld [vmem:[%s1929_s3] ss:$0 sm:$0xff]  ;;  %v219_v3 = vmul.f32 %v712_v1, %v148_v0  ;;  %v147_v6 = vld [vmem:[%s1927_s1 + $0x8] sm:$0xff]  ;;  %v220_v8 = vmul.f32 %v712_v1, %v149_v5  ;;  %v153_v18 = vld [vmem:[%s1927_s1 + $0x38] sm:$0xff] }
   0x3   :  { %v146_v4 = vld [vmem:[%s1927_s1] sm:$0xff]  ;;  %v218_v9 = vmul.f32 %v712_v1, %v147_v6  ;;  %v151_v10 = vld [vmem:[%s1927_s1 + $0x28] sm:$0xff]  ;;  %v152_v19 = vld [vmem:[%s1927_s1 + $0x30] sm:$0xff]  ;;  %v224_v25 = vmul.f32 %v712_v1, %v153_v18 }
   0x4   :  { %v217_v7 = vmul.f32 %v712_v1, %v146_v4  ;;  %v290_v11 = vadd.f32 %v717_v2, %v219_v3  ;;  %v150_v12 = vld [vmem:[%s1927_s1 + $0x20] sm:$0xff]  ;;  %v291_v14 = vadd.f32 %v717_v2, %v220_v8  ;;  %v222_v15 = vmul.f32 %v712_v1, %v151_v10  ;;  %v155_v20 = vld [vmem:[%s1927_s1 + $0x48] sm:$0xff]  ;;  %v157_v22 = vld [vmem:[%s1927_s1 + $0x58] sm:$0xff] }
   0x5   :  { %v289_v16 = vadd.f32 %v717_v2, %v218_v9  ;;  %v221_v17 = vmul.f32 %v712_v1, %v150_v12  ;;  %v154_v21 = vld [vmem:[%s1927_s1 + $0x40] sm:$0xff]  ;;  %v156_v23 = vld [vmem:[%s1927_s1 + $0x50] sm:$0xff]  ;;  %v159_v26 = vld [vmem:[%s1927_s1 + $0x68] sm:$0xff]  ;;  %v223_v30 = vmul.f32 %v712_v1, %v152_v19  ;;  %v226_v32 = vmul.f32 %v712_v1, %v155_v20 }
   0x6   :  { %v288_v13 = vadd.f32 %v717_v2, %v217_v7  ;;  %420 = vrot.lane.b32.xlu1 %v290_v11, %s680_s29  ;;  %v293_v24 = vadd.f32 %v717_v2, %v222_v15  ;;  %v158_v27 = vld [vmem:[%s1927_s1 + $0x60] sm:$0xff]  ;;  %v161_v28 = vld [vmem:[%s1927_s1 + $0x78] sm:$0xff]  ;;  %v160_v31 = vld [vmem:[%s1927_s1 + $0x70] sm:$0xff]  ;;  %v225_v33 = vmul.f32 %v712_v1, %v154_v21  ;;  %v228_v34 = vmul.f32 %v712_v1, %v157_v22 }
   0x7   :  { %v292_v29 = vadd.f32 %v717_v2, %v221_v17  ;;  %v227_v35 = vmul.f32 %v712_v1, %v156_v23  ;;  %v230_v36 = vmul.f32 %v712_v1, %v159_v26  ;;  %v229_v37 = vmul.f32 %v712_v1, %v158_v27  ;;  %v163_v41 = vld [vmem:[%s1927_s1 + $0x88] sm:$0xff]  ;;  %v162_v43 = vld [vmem:[%s1927_s1 + $0x80] sm:$0xff]  ;;  %v165_v44 = vld [vmem:[%s1927_s1 + $0x98] sm:$0xff] }
   0x8   :  { %416 = vrot.lane.b32.xlu0 %v288_v13, %s680_s29  ;;  %v232_v38 = vmul.f32 %v712_v1, %v161_v28  ;;  %v295_v39 = vadd.f32 %v717_v2, %v224_v25  ;;  %v231_v40 = vmul.f32 %v712_v1, %v160_v31  ;;  %v294_v42 = vadd.f32 %v717_v2, %v223_v30  ;;  %v179_v45 = vld [vmem:[%s1927_s1 + $0x108] sm:$0xff]  ;;  %v178_v49 = vld [vmem:[%s1927_s1 + $0x100] sm:$0xff]  ;;  %v181_v50 = vld [vmem:[%s1927_s1 + $0x118] sm:$0xff] }
   0x9   :  { %v297_v46 = vadd.f32 %v717_v2, %v226_v32  ;;  %v296_v47 = vadd.f32 %v717_v2, %v225_v33  ;;  %v809_v48 = vadd.f32 %v717_v2, %v228_v34  ;;  %v180_v51 = vld [vmem:[%s1927_s1 + $0x110] sm:$0xff]  ;;  %v821_v52 = vadd.f32 %v717_v2, %v227_v35  ;;  %v183_v56 = vld [vmem:[%s1927_s1 + $0x128] sm:$0xff]  ;;  %v182_v57 = vld [vmem:[%s1927_s1 + $0x120] sm:$0xff] }
   0xa   :  { %422 = vrot.lane.b32.xlu1 %v291_v14, %s680_s29  ;;  %v824_v53 = vadd.f32 %v717_v2, %v230_v36  ;;  %v827_v54 = vadd.f32 %v717_v2, %v229_v37  ;;  %v830_v55 = vadd.f32 %v717_v2, %v232_v38  ;;  %v185_v58 = vld [vmem:[%s1927_s1 + $0x138] sm:$0xff]  ;;  %v843_v59 = vadd.f32 %v717_v2, %v231_v40  ;;  %v184_v63 = vld [vmem:[%s1927_s1 + $0x130] sm:$0xff]  ;;  %v187_v0 = vld [vmem:[%s1927_s1 + $0x148] sm:$0xff] }
   0xb   :  { %v846_v60 = vmul.f32 %v712_v1, %v163_v41  ;;  %v849_v61 = vmul.f32 %v712_v1, %v162_v43  ;;  %v250_v62 = vmul.f32 %v712_v1, %v179_v45  ;;  %v186_v3 = vld [vmem:[%s1927_s1 + $0x140] sm:$0xff]  ;;  %v863_v4 = vmul.f32 %v712_v1, %v165_v44  ;;  %v189_v8 = vld [vmem:[%s1927_s1 + $0x158] sm:$0xff]  ;;  %v188_v9 = vld [vmem:[%s1927_s1 + $0x150] sm:$0xff] }
   0xc   :  { %418 = vrot.lane.b32.xlu0 %v289_v16, %s680_s29  ;;  %v249_v5 = vmul.f32 %v712_v1, %v178_v49  ;;  %v252_v6 = vmul.f32 %v712_v1, %v181_v50  ;;  %v251_v7 = vmul.f32 %v712_v1, %v180_v51  ;;  %v191_v10 = vld [vmem:[%s1927_s1 + $0x168] sm:$0xff]  ;;  %v254_v12 = vmul.f32 %v712_v1, %v183_v56  ;;  %v190_v15 = vld [vmem:[%s1927_s1 + $0x160] sm:$0xff]  ;;  %v193_v16 = vld [vmem:[%s1927_s1 + $0x178] sm:$0xff] }
   0xd   :  { %v878_v11 = vadd.f32 %v717_v2, %v250_v62  ;;  %v253_v13 = vmul.f32 %v712_v1, %v182_v57  ;;  %v256_v14 = vmul.f32 %v712_v1, %v185_v58  ;;  %v192_v17 = vld [vmem:[%s1927_s1 + $0x170] sm:$0xff]  ;;  %v255_v21 = vmul.f32 %v712_v1, %v184_v63  ;;  %v195_v22 = vld [vmem:[%s1927_s1 + $0x188] sm:$0xff]  ;;  %v197_v30 = vld [vmem:[%s1927_s1 + $0x198] sm:$0xff] }
   0xe   :  { %426 = vrot.lane.b32.xlu1 %v293_v24, %s680_s29  ;;  %v893_v18 = vadd.f32 %v717_v2, %v249_v5  ;;  %v896_v19 = vadd.f32 %v717_v2, %v252_v6  ;;  %v899_v20 = vadd.f32 %v717_v2, %v251_v7  ;;  %v19_v23 = vld [vmem:[%s1930_s0 + $0x10] sm:$0xff]  ;;  %v17_v24 = vld [vmem:[%s1930_s0] sm:$0xff]  ;;  %v913_v25 = vadd.f32 %v717_v2, %v254_v12  ;;  %v20_v32 = vld [vmem:[%s1930_s0 + $0x18] sm:$0xff] }
   0xf   :  { %v916_v26 = vadd.f32 %v717_v2, %v253_v13  ;;  %v919_v27 = vadd.f32 %v717_v2, %v256_v14  ;;  %v258_v28 = vmul.f32 %v712_v1, %v187_v0  ;;  %v196_v31 = vld [vmem:[%s1927_s1 + $0x190] sm:$0xff]  ;;  %84 = vst.msk [vmem:[%s1931_s4 + $0x10] sm:$0xff] %vm81_vm0, %v19_v23  ;;  %82 = vst.msk [vmem:[%s1931_s4] sm:$0xff] %vm81_vm0, %v17_v24  ;;  %v18_v33 = vld [vmem:[%s1930_s0 + $0x8] sm:$0xff] }
  0x10   :  { %424 = vrot.lane.b32.xlu0 %v292_v29, %s680_s29  ;;  %v194_v29 = vld [vmem:[%s1927_s1 + $0x180] sm:$0xff]  ;;  %v947_v34 = vadd.f32 %v717_v2, %v255_v21  ;;  %v257_v35 = vmul.f32 %v712_v1, %v186_v3  ;;  %v260_v36 = vmul.f32 %v712_v1, %v189_v8  ;;  %v259_v37 = vmul.f32 %v712_v1, %v188_v9  ;;  %v199_v38 = vld [vmem:[%s1927_s1 + $0x1a8] sm:$0xff]  ;;  %v201_v45 = vld [vmem:[%s1927_s1 + $0x1b8] sm:$0xff] }
  0x11   :  { %85 = vst.msk [vmem:[%s1931_s4 + $0x18] sm:$0xff] %vm81_vm0, %v20_v32  ;;  %83 = vst.msk [vmem:[%s1931_s4 + $0x8] sm:$0xff] %vm81_vm0, %v18_v33  ;;  %v22_v40 = vld [vmem:[%s1930_s0 + $0x28] sm:$0xff]  ;;  %v970_v41 = vadd.f32 %v717_v2, %v258_v28  ;;  %v261_v43 = vmul.f32 %v712_v1, %v190_v15  ;;  %v264_v44 = vmul.f32 %v712_v1, %v193_v16  ;;  %v24_v58 = vld [vmem:[%s1930_s0 + $0x38] sm:$0xff] }
  0x12   :  { %430 = vrot.lane.b32.xlu1 %v295_v39, %s680_s29  ;;  %v198_v39 = vld [vmem:[%s1927_s1 + $0x1a0] sm:$0xff]  ;;  %87 = vst.msk [vmem:[%s1931_s4 + $0x28] sm:$0xff] %vm81_vm0, %v22_v40  ;;  %v989_v49 = vadd.f32 %v717_v2, %v257_v35  ;;  %v992_v50 = vadd.f32 %v717_v2, %v260_v36  ;;  %v995_v51 = vadd.f32 %v717_v2, %v259_v37  ;;  %v203_v57 = vld [vmem:[%s1927_s1 + $0x1c8] sm:$0xff] }
  0x13   :  { %v263_v56 = vmul.f32 %v712_v1, %v192_v17  ;;  %v23_v62 = vld [vmem:[%s1930_s0 + $0x30] sm:$0xff]  ;;  %v26_v63 = vld [vmem:[%s1930_s0 + $0x48] sm:$0xff]  ;;  %v1020_v3 = vadd.f32 %v717_v2, %v261_v43  ;;  %v1023_v5 = vadd.f32 %v717_v2, %v264_v44  ;;  %v266_v6 = vmul.f32 %v712_v1, %v195_v22  ;;  %v202_v7 = vld [vmem:[%s1927_s1 + $0x1c0] sm:$0xff]  ;;  %89 = vst.msk [vmem:[%s1931_s4 + $0x38] sm:$0xff] %vm81_vm0, %v24_v58 }
  0x14   :  { %428 = vrot.lane.b32.xlu0 %v294_v42, %s680_s29  ;;  %v262_v42 = vmul.f32 %v712_v1, %v191_v10  ;;  %v205_v8 = vld [vmem:[%s1927_s1 + $0x1d8] sm:$0xff]  ;;  %88 = vst.msk [vmem:[%s1931_s4 + $0x30] sm:$0xff] %vm81_vm0, %v23_v62  ;;  %91 = vst.msk [vmem:[%s1931_s4 + $0x48] sm:$0xff] %vm81_vm0, %v26_v63  ;;  %v265_v14 = vmul.f32 %v712_v1, %v194_v29  ;;  %v268_v15 = vmul.f32 %v712_v1, %v197_v30 }
  0x15   :  { %v25_v9 = vld [vmem:[%s1930_s0 + $0x40] sm:$0xff]  ;;  %v28_v10 = vld [vmem:[%s1930_s0 + $0x58] sm:$0xff]  ;;  %v27_v12 = vld [vmem:[%s1930_s0 + $0x50] sm:$0xff]  ;;  %v1059_v13 = vadd.f32 %v717_v2, %v263_v56  ;;  %v267_v16 = vmul.f32 %v712_v1, %v196_v31  ;;  %v1092_v24 = vadd.f32 %v717_v2, %v266_v6  ;;  %v270_v28 = vmul.f32 %v712_v1, %v199_v38 }
  0x16   :  { %434 = vrot.lane.b32.xlu1 %v297_v46, %s680_s29  ;;  %v200_v46 = vld [vmem:[%s1927_s1 + $0x1b0] sm:$0xff]  ;;  %v1017_v0 = vadd.f32 %v717_v2, %v262_v42  ;;  %v207_v17 = vld [vmem:[%s1927_s1 + $0x1e8] sm:$0xff]  ;;  %v206_v21 = vld [vmem:[%s1927_s1 + $0x1e0] sm:$0xff]  ;;  %v269_v29 = vmul.f32 %v712_v1, %v198_v39  ;;  %v272_v30 = vmul.f32 %v712_v1, %v201_v45  ;;  %v1119_v35 = vadd.f32 %v717_v2, %v265_v14 }
  0x17   :  { %90 = vst.msk [vmem:[%s1931_s4 + $0x40] sm:$0xff] %vm81_vm0, %v25_v9  ;;  %93 = vst.msk [vmem:[%s1931_s4 + $0x58] sm:$0xff] %vm81_vm0, %v28_v10  ;;  %v29_v22 = vld [vmem:[%s1930_s0 + $0x60] sm:$0xff]  ;;  %v32_v23 = vld [vmem:[%s1930_s0 + $0x78] sm:$0xff]  ;;  %v1122_v36 = vadd.f32 %v717_v2, %v268_v15  ;;  %v1125_v37 = vadd.f32 %v717_v2, %v267_v16  ;;  %v271_v38 = vmul.f32 %v712_v1, %v200_v46 }
  0x18   :  { %432 = vrot.lane.b32.xlu0 %v296_v47, %s680_s29  ;;  %v21_v47 = vld [vmem:[%s1930_s0 + $0x20] sm:$0xff]  ;;  %92 = vst.msk [vmem:[%s1931_s4 + $0x50] sm:$0xff] %vm81_vm0, %v27_v12  ;;  %94 = vst.msk [vmem:[%s1931_s4 + $0x60] sm:$0xff] %vm81_vm0, %v29_v22  ;;  %v1152_v43 = vadd.f32 %v717_v2, %v270_v28  ;;  %v1155_v44 = vadd.f32 %v717_v2, %v269_v29  ;;  %v1158_v45 = vadd.f32 %v717_v2, %v272_v30 }
  0x19   :  { %86 = vst.msk [vmem:[%s1931_s4 + $0x20] sm:$0xff] %vm81_vm0, %v21_v47  ;;  %97 = vst.msk [vmem:[%s1931_s4 + $0x78] sm:$0xff] %vm81_vm0, %v32_v23  ;;  %v31_v31 = vld [vmem:[%s1930_s0 + $0x70] sm:$0xff]  ;;  %v34_v32 = vld [vmem:[%s1930_s0 + $0x88] sm:$0xff]  ;;  %v274_v46 = vmul.f32 %v712_v1, %v203_v57  ;;  %v273_v56 = vmul.f32 %v712_v1, %v202_v7  ;;  %v276_v57 = vmul.f32 %v712_v1, %v205_v8 }
  0x1a   :  { %438 = vrot.lane.b32.xlu1 %v809_v48, %s680_s29  ;;  %v204_v48 = vld [vmem:[%s1927_s1 + $0x1d0] sm:$0xff]  ;;  %v33_v33 = vld [vmem:[%s1930_s0 + $0x80] sm:$0xff]  ;;  %v209_v39 = vld [vmem:[%s1927_s1 + $0x1f8] sm:$0xff]  ;;  %v278_v6 = vmul.f32 %v712_v1, %v207_v17  ;;  %v305_v15 = vadd.f32 %v717_v2, %v846_v60  ;;  %v307_v28 = vadd.f32 %v717_v2, %v863_v4 }
  0x1b   :  { %96 = vst.msk [vmem:[%s1931_s4 + $0x70] sm:$0xff] %vm81_vm0, %v31_v31  ;;  %99 = vst.msk [vmem:[%s1931_s4 + $0x88] sm:$0xff] %vm81_vm0, %v34_v32  ;;  %v36_v40 = vld [vmem:[%s1930_s0 + $0x98] sm:$0xff]  ;;  %v35_v42 = vld [vmem:[%s1930_s0 + $0x90] sm:$0xff]  ;;  %v275_v58 = vmul.f32 %v712_v1, %v204_v48  ;;  %v1184_v63 = vadd.f32 %v717_v2, %v274_v46  ;;  %v280_v9 = vmul.f32 %v712_v1, %v209_v39 }
  0x1c   :  { %436 = vrot.lane.b32.xlu0 %v821_v52, %s680_s29  ;;  %v30_v52 = vld [vmem:[%s1930_s0 + $0x68] sm:$0xff]  ;;  %98 = vst.msk [vmem:[%s1931_s4 + $0x80] sm:$0xff] %vm81_vm0, %v33_v33  ;;  %v208_v47 = vld [vmem:[%s1927_s1 + $0x1f0] sm:$0xff]  ;;  %v1196_v48 = vadd.f32 %v717_v2, %v273_v56  ;;  %v1199_v10 = vadd.f32 %v717_v2, %v276_v57  ;;  %v1218_v16 = vadd.f32 %v717_v2, %v278_v6 }
  0x1d   :  { %95 = vst.msk [vmem:[%s1931_s4 + $0x68] sm:$0xff] %vm81_vm0, %v30_v52  ;;  %101 = vst.msk [vmem:[%s1931_s4 + $0x98] sm:$0xff] %vm81_vm0, %v36_v40  ;;  %v164_v62 = vld [vmem:[%s1927_s1 + $0x90] sm:$0xff]  ;;  %v38_v7 = vld [vmem:[%s1930_s0 + $0xa8] sm:$0xff]  ;;  %v1202_v12 = vadd.f32 %v717_v2, %v275_v58  ;;  %v279_v14 = vmul.f32 %v712_v1, %v208_v47  ;;  %v304_v52 = vadd.f32 %v717_v2, %v849_v61 }
  0x1e   :  { %442 = vrot.lane.b32.xlu1 %v824_v53, %s680_s29  ;;  %100 = vst.msk [vmem:[%s1931_s4 + $0x90] sm:$0xff] %vm81_vm0, %v35_v42  ;;  %v1175_v53 = vadd.f32 %v717_v2, %v271_v38  ;;  %v37_v8 = vld [vmem:[%s1930_s0 + $0xa0] sm:$0xff]  ;;  %103 = vst.msk [vmem:[%s1931_s4 + $0xa8] sm:$0xff] %vm81_vm0, %v38_v7 }
  0x1f   :  { %102 = vst.msk [vmem:[%s1931_s4 + $0xa0] sm:$0xff] %vm81_vm0, %v37_v8  ;;  %v167_v60 = vld [vmem:[%s1927_s1 + $0xa8] sm:$0xff]  ;;  %v1235_v22 = vadd.f32 %v717_v2, %v279_v14  ;;  %v166_v23 = vld [vmem:[%s1927_s1 + $0xa0] sm:$0xff]  ;;  %v39_v61 = vld [vmem:[%s1930_s0 + $0xb0] sm:$0xff] }
  0x20   :  { %440 = vrot.lane.b32.xlu0 %v827_v54, %s680_s29  ;;  %v277_v54 = vmul.f32 %v712_v1, %v206_v21  ;;  %v1224_v21 = vadd.f32 %v717_v2, %v280_v9  ;;  %104 = vst.msk [vmem:[%s1931_s4 + $0xb0] sm:$0xff] %vm81_vm0, %v39_v61  ;;  %v238_v29 = vmul.f32 %v712_v1, %v167_v60  ;;  %v169_v32 = vld [vmem:[%s1927_s1 + $0xb8] sm:$0xff]  ;;  %v168_v33 = vld [vmem:[%s1927_s1 + $0xb0] sm:$0xff] }
  0x21   :  { %v237_v31 = vmul.f32 %v712_v1, %v166_v23  ;;  %v42_v4 = vld [vmem:[%s1930_s0 + $0xc8] sm:$0xff]  ;;  %v41_v38 = vld [vmem:[%s1930_s0 + $0xc0] sm:$0xff]  ;;  %v240_v40 = vmul.f32 %v712_v1, %v169_v32  ;;  %v239_v46 = vmul.f32 %v712_v1, %v168_v33  ;;  %v44_v57 = vld [vmem:[%s1930_s0 + $0xd8] sm:$0xff] }
  0x22   :  { %446 = vrot.lane.b32.xlu1 %v830_v55, %s680_s29  ;;  %v1221_v17 = vadd.f32 %v717_v2, %v277_v54  ;;  %v235_v55 = vmul.f32 %v712_v1, %v164_v62  ;;  %107 = vst.msk [vmem:[%s1931_s4 + $0xc8] sm:$0xff] %vm81_vm0, %v42_v4  ;;  %106 = vst.msk [vmem:[%s1931_s4 + $0xc0] sm:$0xff] %vm81_vm0, %v41_v38  ;;  %v309_v39 = vadd.f32 %v717_v2, %v238_v29  ;;  %v171_v47 = vld [vmem:[%s1927_s1 + $0xc8] sm:$0xff] }
  0x23   :  { %v308_v42 = vadd.f32 %v717_v2, %v237_v31  ;;  %v170_v56 = vld [vmem:[%s1927_s1 + $0xc0] sm:$0xff]  ;;  %v43_v58 = vld [vmem:[%s1930_s0 + $0xd0] sm:$0xff]  ;;  %109 = vst.msk [vmem:[%s1931_s4 + $0xd8] sm:$0xff] %vm81_vm0, %v44_v57  ;;  %v311_v62 = vadd.f32 %v717_v2, %v240_v40  ;;  %v242_v6 = vmul.f32 %v712_v1, %v171_v47  ;;  %v310_v54 = vadd.f32 %v717_v2, %v239_v46  ;;  %v173_v7 = vld [vmem:[%s1927_s1 + $0xd8] sm:$0xff] }
  0x24   :  { %444 = vrot.lane.b32.xlu0 %v843_v59, %s680_s29  ;;  %v40_v59 = vld [vmem:[%s1930_s0 + $0xb8] sm:$0xff]  ;;  %v306_v30 = vadd.f32 %v717_v2, %v235_v55  ;;  %108 = vst.msk [vmem:[%s1931_s4 + $0xd0] sm:$0xff] %vm81_vm0, %v43_v58  ;;  %v241_v9 = vmul.f32 %v712_v1, %v170_v56  ;;  %v172_v8 = vld [vmem:[%s1927_s1 + $0xd0] sm:$0xff]  ;;  %v244_v55 = vmul.f32 %v712_v1, %v173_v7 }
  0x25   :  { %105 = vst.msk [vmem:[%s1931_s4 + $0xb8] sm:$0xff] %vm81_vm0, %v40_v59  ;;  %v46_v14 = vld [vmem:[%s1930_s0 + $0xe8] sm:$0xff]  ;;  %v243_v23 = vmul.f32 %v712_v1, %v172_v8  ;;  %v174_v61 = vld [vmem:[%s1927_s1 + $0xe0] sm:$0xff]  ;;  %v47_v29 = vld [vmem:[%s1930_s0 + $0xf0] sm:$0xff] }
  0x26   :  { %450 = vrot.lane.b32.xlu1 %v305_v15, %s680_s29  ;;  %v45_v15 = vld [vmem:[%s1930_s0 + $0xe0] sm:$0xff]  ;;  %111 = vst.msk [vmem:[%s1931_s4 + $0xe8] sm:$0xff] %vm81_vm0, %v46_v14  ;;  %v312_v60 = vadd.f32 %v717_v2, %v241_v9  ;;  %v175_v59 = vld [vmem:[%s1927_s1 + $0xe8] sm:$0xff]  ;;  %v245_v33 = vmul.f32 %v712_v1, %v174_v61 }
  0x27   :  { %110 = vst.msk [vmem:[%s1931_s4 + $0xe0] sm:$0xff] %vm81_vm0, %v45_v15  ;;  %112 = vst.msk [vmem:[%s1931_s4 + $0xf0] sm:$0xff] %vm81_vm0, %v47_v29  ;;  %v246_v31 = vmul.f32 %v712_v1, %v175_v59  ;;  %v314_v32 = vadd.f32 %v717_v2, %v243_v23  ;;  %v177_v4 = vld [vmem:[%s1927_s1 + $0xf8] sm:$0xff]  ;;  %v176_v38 = vld [vmem:[%s1927_s1 + $0xf0] sm:$0xff] }
  0x28   :  { %448 = vrot.lane.b32.xlu0 %v304_v52, %s680_s29  ;;  %v313_v52 = vadd.f32 %v717_v2, %v242_v6  ;;  %v49_v40 = vld [vmem:[%s1930_s0 + $0x100] sm:$0xff]  ;;  %v248_v46 = vmul.f32 %v712_v1, %v177_v4  ;;  %v316_v47 = vadd.f32 %v717_v2, %v245_v33  ;;  %v247_v56 = vmul.f32 %v712_v1, %v176_v38  ;;  %v52_v57 = vld [vmem:[%s1930_s0 + $0x118] sm:$0xff]  ;;  %v51_v58 = vld [vmem:[%s1930_s0 + $0x110] sm:$0xff] }
  0x29   :  { %114 = vst.msk [vmem:[%s1931_s4 + $0x100] sm:$0xff] %vm81_vm0, %v49_v40  ;;  %117 = vst.msk [vmem:[%s1931_s4 + $0x118] sm:$0xff] %vm81_vm0, %v52_v57  ;;  %v54_v6 = vld [vmem:[%s1930_s0 + $0x128] sm:$0xff]  ;;  %v55_v9 = vld [vmem:[%s1930_s0 + $0x130] sm:$0xff] }
  0x2a   :  { %454 = vrot.lane.b32.xlu1 %v307_v28, %s680_s29  ;;  %v48_v28 = vld [vmem:[%s1930_s0 + $0xf8] sm:$0xff]  ;;  %116 = vst.msk [vmem:[%s1931_s4 + $0x110] sm:$0xff] %vm81_vm0, %v51_v58  ;;  %v319_v1 = vadd.f32 %v717_v2, %v248_v46  ;;  %119 = vst.msk [vmem:[%s1931_s4 + $0x128] sm:$0xff] %vm81_vm0, %v54_v6 }
  0x2b   :  { %113 = vst.msk [vmem:[%s1931_s4 + $0xf8] sm:$0xff] %vm81_vm0, %v48_v28  ;;  %120 = vst.msk [vmem:[%s1931_s4 + $0x130] sm:$0xff] %vm81_vm0, %v55_v9  ;;  %v58_v7 = vld [vmem:[%s1930_s0 + $0x148] sm:$0xff]  ;;  %v57_v8 = vld [vmem:[%s1930_s0 + $0x140] sm:$0xff] }
  0x2c   :  { %452 = vrot.lane.b32.xlu0 %v306_v30, %s680_s29  ;;  %v315_v30 = vadd.f32 %v717_v2, %v244_v55  ;;  %123 = vst.msk [vmem:[%s1931_s4 + $0x148] sm:$0xff] %vm81_vm0, %v58_v7  ;;  %122 = vst.msk [vmem:[%s1931_s4 + $0x140] sm:$0xff] %vm81_vm0, %v57_v8 }
  0x2e   :  { %458 = vrot.lane.b32.xlu1 %v309_v39, %s680_s29  ;;  %v50_v39 = vld [vmem:[%s1930_s0 + $0x108] sm:$0xff] }
  0x2f   :  { %115 = vst.msk [vmem:[%s1931_s4 + $0x108] sm:$0xff] %vm81_vm0, %v50_v39 }
  0x30   :  { %456 = vrot.lane.b32.xlu0 %v308_v42, %s680_s29  ;;  %v317_v42 = vadd.f32 %v717_v2, %v246_v31 }
  0x32   :  { %462 = vrot.lane.b32.xlu1 %v311_v62, %s680_s29  ;;  %v318_v62 = vadd.f32 %v717_v2, %v247_v56  ;;  %v56_v2 = vld [vmem:[%s1930_s0 + $0x138] sm:$0xff] }
  0x33   :  { %121 = vst.msk [vmem:[%s1931_s4 + $0x138] sm:$0xff] %vm81_vm0, %v56_v2 }
  0x34   :  { %460 = vrot.lane.b32.xlu0 %v310_v54, %s680_s29  ;;  %v53_v54 = vld [vmem:[%s1930_s0 + $0x120] sm:$0xff] }
  0x35   :  { %118 = vst.msk [vmem:[%s1931_s4 + $0x120] sm:$0xff] %vm81_vm0, %v53_v54 }
  0x36   :  { %466 = vrot.lane.b32.xlu1 %v313_v52, %s680_s29 }
  0x38   :  { %464 = vrot.lane.b32.xlu0 %v312_v60, %s680_s29 }
  0x3a   :  { %470 = vrot.lane.b32.xlu1 %v315_v30, %s680_s29 }
  0x3c   :  { %468 = vrot.lane.b32.xlu0 %v314_v32, %s680_s29 }
  0x3e   :  { %474 = vrot.lane.b32.xlu1 %v317_v42, %s680_s29 }
  0x40   :  { %472 = vrot.lane.b32.xlu0 %v316_v47, %s680_s29 }
  0x42   :  { %478 = vrot.lane.b32.xlu1 %v319_v1, %s680_s29 }
  0x44   :  { %476 = vrot.lane.b32.xlu0 %v318_v62, %s680_s29 }
  0x46   :  { %482 = vrot.lane.b32.xlu1 %v878_v11, %s680_s29  ;;  %v60_v11 = vld [vmem:[%s1930_s0 + $0x158] sm:$0xff] }
  0x47   :  { %125 = vst.msk [vmem:[%s1931_s4 + $0x158] sm:$0xff] %vm81_vm0, %v60_v11 }
  0x48   :  { %480 = vrot.lane.b32.xlu0 %v893_v18, %s680_s29  ;;  %v59_v18 = vld [vmem:[%s1930_s0 + $0x150] sm:$0xff] }
  0x49   :  { %124 = vst.msk [vmem:[%s1931_s4 + $0x150] sm:$0xff] %vm81_vm0, %v59_v18 }
  0x4a   :  { %486 = vrot.lane.b32.xlu1 %v896_v19, %s680_s29  ;;  %v62_v19 = vld [vmem:[%s1930_s0 + $0x168] sm:$0xff] }
  0x4b   :  { %127 = vst.msk [vmem:[%s1931_s4 + $0x168] sm:$0xff] %vm81_vm0, %v62_v19 }
  0x4c   :  { %484 = vrot.lane.b32.xlu0 %v899_v20, %s680_s29  ;;  %v61_v20 = vld [vmem:[%s1930_s0 + $0x160] sm:$0xff] }
  0x4d   :  { %126 = vst.msk [vmem:[%s1931_s4 + $0x160] sm:$0xff] %vm81_vm0, %v61_v20 }
  0x4e   :  { %490 = vrot.lane.b32.xlu1 %v913_v25, %s680_s29  ;;  %v64_v25 = vld [vmem:[%s1930_s0 + $0x178] sm:$0xff] }
  0x4f   :  { %129 = vst.msk [vmem:[%s1931_s4 + $0x178] sm:$0xff] %vm81_vm0, %v64_v25 }
  0x50   :  { %488 = vrot.lane.b32.xlu0 %v916_v26, %s680_s29  ;;  %v63_v26 = vld [vmem:[%s1930_s0 + $0x170] sm:$0xff] }
  0x51   :  { %128 = vst.msk [vmem:[%s1931_s4 + $0x170] sm:$0xff] %vm81_vm0, %v63_v26 }
  0x52   :  { %494 = vrot.lane.b32.xlu1 %v919_v27, %s680_s29  ;;  %v66_v27 = vld [vmem:[%s1930_s0 + $0x188] sm:$0xff] }
  0x53   :  { %131 = vst.msk [vmem:[%s1931_s4 + $0x188] sm:$0xff] %vm81_vm0, %v66_v27 }
  0x54   :  { %492 = vrot.lane.b32.xlu0 %v947_v34, %s680_s29  ;;  %v65_v34 = vld [vmem:[%s1930_s0 + $0x180] sm:$0xff] }
  0x55   :  { %130 = vst.msk [vmem:[%s1931_s4 + $0x180] sm:$0xff] %vm81_vm0, %v65_v34 }
  0x56   :  { %498 = vrot.lane.b32.xlu1 %v970_v41, %s680_s29  ;;  %v68_v41 = vld [vmem:[%s1930_s0 + $0x198] sm:$0xff] }
  0x57   :  { %133 = vst.msk [vmem:[%s1931_s4 + $0x198] sm:$0xff] %vm81_vm0, %v68_v41 }
  0x58   :  { %496 = vrot.lane.b32.xlu0 %v989_v49, %s680_s29  ;;  %v67_v49 = vld [vmem:[%s1930_s0 + $0x190] sm:$0xff] }
  0x59   :  { %132 = vst.msk [vmem:[%s1931_s4 + $0x190] sm:$0xff] %vm81_vm0, %v67_v49 }
  0x5a   :  { %502 = vrot.lane.b32.xlu1 %v992_v50, %s680_s29  ;;  %v70_v50 = vld [vmem:[%s1930_s0 + $0x1a8] sm:$0xff] }
  0x5b   :  { %135 = vst.msk [vmem:[%s1931_s4 + $0x1a8] sm:$0xff] %vm81_vm0, %v70_v50 }
  0x5c   :  { %500 = vrot.lane.b32.xlu0 %v995_v51, %s680_s29  ;;  %v69_v51 = vld [vmem:[%s1930_s0 + $0x1a0] sm:$0xff] }
  0x5d   :  { %134 = vst.msk [vmem:[%s1931_s4 + $0x1a0] sm:$0xff] %vm81_vm0, %v69_v51 }
  0x5e   :  { %506 = vrot.lane.b32.xlu1 %v1017_v0, %s680_s29  ;;  %v72_v0 = vld [vmem:[%s1930_s0 + $0x1b8] sm:$0xff] }
  0x5f   :  { %137 = vst.msk [vmem:[%s1931_s4 + $0x1b8] sm:$0xff] %vm81_vm0, %v72_v0 }
  0x60   :  { %504 = vrot.lane.b32.xlu0 %v1020_v3, %s680_s29  ;;  %v71_v3 = vld [vmem:[%s1930_s0 + $0x1b0] sm:$0xff] }
  0x61   :  { %136 = vst.msk [vmem:[%s1931_s4 + $0x1b0] sm:$0xff] %vm81_vm0, %v71_v3 }
  0x62   :  { %510 = vrot.lane.b32.xlu1 %v1023_v5, %s680_s29  ;;  %v74_v5 = vld [vmem:[%s1930_s0 + $0x1c8] sm:$0xff] }
  0x63   :  { %139 = vst.msk [vmem:[%s1931_s4 + $0x1c8] sm:$0xff] %vm81_vm0, %v74_v5 }
  0x64   :  { %508 = vrot.lane.b32.xlu0 %v1059_v13, %s680_s29  ;;  %v73_v13 = vld [vmem:[%s1930_s0 + $0x1c0] sm:$0xff] }
  0x65   :  { %138 = vst.msk [vmem:[%s1931_s4 + $0x1c0] sm:$0xff] %vm81_vm0, %v73_v13 }
  0x66   :  { %514 = vrot.lane.b32.xlu1 %v1092_v24, %s680_s29  ;;  %v76_v24 = vld [vmem:[%s1930_s0 + $0x1d8] sm:$0xff] }
  0x67   :  { %141 = vst.msk [vmem:[%s1931_s4 + $0x1d8] sm:$0xff] %vm81_vm0, %v76_v24 }
  0x68   :  { %512 = vrot.lane.b32.xlu0 %v1119_v35, %s680_s29  ;;  %v75_v35 = vld [vmem:[%s1930_s0 + $0x1d0] sm:$0xff] }
  0x69   :  { %140 = vst.msk [vmem:[%s1931_s4 + $0x1d0] sm:$0xff] %vm81_vm0, %v75_v35 }
  0x6a   :  { %518 = vrot.lane.b32.xlu1 %v1122_v36, %s680_s29  ;;  %v78_v36 = vld [vmem:[%s1930_s0 + $0x1e8] sm:$0xff] }
  0x6b   :  { %143 = vst.msk [vmem:[%s1931_s4 + $0x1e8] sm:$0xff] %vm81_vm0, %v78_v36 }
  0x6c   :  { %516 = vrot.lane.b32.xlu0 %v1125_v37, %s680_s29  ;;  %v77_v37 = vld [vmem:[%s1930_s0 + $0x1e0] sm:$0xff] }
  0x6d   :  { %142 = vst.msk [vmem:[%s1931_s4 + $0x1e0] sm:$0xff] %vm81_vm0, %v77_v37 }
  0x6e   :  { %522 = vrot.lane.b32.xlu1 %v1152_v43, %s680_s29  ;;  %v80_v43 = vld [vmem:[%s1930_s0 + $0x1f8] sm:$0xff] }
  0x6f   :  { %145 = vst.msk [vmem:[%s1931_s4 + $0x1f8] sm:$0xff] %vm81_vm0, %v80_v43 }
  0x70   :  { %520 = vrot.lane.b32.xlu0 %v1155_v44, %s680_s29  ;;  %v79_v44 = vld [vmem:[%s1930_s0 + $0x1f0] sm:$0xff] }
  0x71   :  { %144 = vst.msk [vmem:[%s1931_s4 + $0x1f0] sm:$0xff] %vm81_vm0, %v79_v44 }
  0x72   :  { %526 = vrot.lane.b32.xlu1 %v1158_v45, %s680_s29 }
  0x74   :  { %524 = vrot.lane.b32.xlu0 %v1175_v53, %s680_s29 }
  0x76   :  { %530 = vrot.lane.b32.xlu1 %v1184_v63, %s680_s29 }
  0x78   :  { %528 = vrot.lane.b32.xlu0 %v1196_v48, %s680_s29  ;;  %v421_v45 = vpop.permute.xlu1 %420 }
  0x79   :  { %611 = vst.msk [vmem:[%s1931_s4 + $0x10] sm:$0xff] %vm608_vm1, %v421_v45 }
  0x7a   :  { %v417_v53 = vpop.permute.xlu0 %416  ;;  %534 = vrot.lane.b32.xlu1 %v1199_v10, %s680_s29 }
  0x7b   :  { %609 = vst.msk [vmem:[%s1931_s4] sm:$0xff] %vm608_vm1, %v417_v53 }
  0x7c   :  { %532 = vrot.lane.b32.xlu0 %v1202_v12, %s680_s29  ;;  %v423_v63 = vpop.permute.xlu1 %422 }
  0x7d   :  { %612 = vst.msk [vmem:[%s1931_s4 + $0x18] sm:$0xff] %vm608_vm1, %v423_v63 }
  0x7e   :  { %v419_v48 = vpop.permute.xlu0 %418  ;;  %538 = vrot.lane.b32.xlu1 %v1218_v16, %s680_s29 }
  0x7f   :  { %610 = vst.msk [vmem:[%s1931_s4 + $0x8] sm:$0xff] %vm608_vm1, %v419_v48 }
  0x80   :  { %536 = vrot.lane.b32.xlu0 %v1221_v17, %s680_s29  ;;  %v427_v10 = vpop.permute.xlu1 %426 }
  0x81   :  { %614 = vst.msk [vmem:[%s1931_s4 + $0x28] sm:$0xff] %vm608_vm1, %v427_v10 }
  0x82   :  { %v425_v12 = vpop.permute.xlu0 %424  ;;  %542 = vrot.lane.b32.xlu1 %v1224_v21, %s680_s29 }
  0x83   :  { %613 = vst.msk [vmem:[%s1931_s4 + $0x20] sm:$0xff] %vm608_vm1, %v425_v12 }
  0x84   :  { %540 = vrot.lane.b32.xlu0 %v1235_v22, %s680_s29  ;;  %v431_v16 = vpop.permute.xlu1 %430 }
  0x85   :  { %616 = vst.msk [vmem:[%s1931_s4 + $0x38] sm:$0xff] %vm608_vm1, %v431_v16 }
  0x86   :  { %v429_v17 = vpop.permute.xlu0 %428 }
  0x87   :  { %615 = vst.msk [vmem:[%s1931_s4 + $0x30] sm:$0xff] %vm608_vm1, %v429_v17 }
  0x88   :  { %v435_v14 = vpop.permute.xlu1 %434 }
  0x89   :  { %618 = vst.msk [vmem:[%s1931_s4 + $0x48] sm:$0xff] %vm608_vm1, %v435_v14 }
  0x8a   :  { %v433_v21 = vpop.permute.xlu0 %432 }
  0x8b   :  { %617 = vst.msk [vmem:[%s1931_s4 + $0x40] sm:$0xff] %vm608_vm1, %v433_v21 }
  0x8c   :  { %v439_v22 = vpop.permute.xlu1 %438 }
  0x8d   :  { %620 = vst.msk [vmem:[%s1931_s4 + $0x58] sm:$0xff] %vm608_vm1, %v439_v22 }
  0x8e   :  { %v437_v15 = vpop.permute.xlu0 %436 }
  0x8f   :  { %619 = vst.msk [vmem:[%s1931_s4 + $0x50] sm:$0xff] %vm608_vm1, %v437_v15 }
  0x90   :  { %v443_v52 = vpop.permute.xlu1 %442 }
  0x91   :  { %622 = vst.msk [vmem:[%s1931_s4 + $0x68] sm:$0xff] %vm608_vm1, %v443_v52 }
  0x92   :  { %v441_v55 = vpop.permute.xlu0 %440 }
  0x93   :  { %621 = vst.msk [vmem:[%s1931_s4 + $0x60] sm:$0xff] %vm608_vm1, %v441_v55 }
  0x94   :  { %v447_v60 = vpop.permute.xlu1 %446 }
  0x95   :  { %624 = vst.msk [vmem:[%s1931_s4 + $0x78] sm:$0xff] %vm608_vm1, %v447_v60 }
  0x96   :  { %v445_v23 = vpop.permute.xlu0 %444 }
  0x97   :  { %623 = vst.msk [vmem:[%s1931_s4 + $0x70] sm:$0xff] %vm608_vm1, %v445_v23 }
  0x98   :  { %v451_v59 = vpop.permute.xlu1 %450 }
  0x99   :  { %626 = vst.msk [vmem:[%s1931_s4 + $0x88] sm:$0xff] %vm608_vm1, %v451_v59 }
  0x9a   :  { %v449_v61 = vpop.permute.xlu0 %448 }
  0x9b   :  { %625 = vst.msk [vmem:[%s1931_s4 + $0x80] sm:$0xff] %vm608_vm1, %v449_v61 }
  0x9c   :  { %v455_v28 = vpop.permute.xlu1 %454 }
  0x9d   :  { %628 = vst.msk [vmem:[%s1931_s4 + $0x98] sm:$0xff] %vm608_vm1, %v455_v28 }
  0x9e   :  { %v453_v29 = vpop.permute.xlu0 %452 }
  0x9f   :  { %627 = vst.msk [vmem:[%s1931_s4 + $0x90] sm:$0xff] %vm608_vm1, %v453_v29 }
  0xa0   :  { %v459_v30 = vpop.permute.xlu1 %458 }
  0xa1   :  { %630 = vst.msk [vmem:[%s1931_s4 + $0xa8] sm:$0xff] %vm608_vm1, %v459_v30 }
  0xa2   :  { %v457_v31 = vpop.permute.xlu0 %456 }
  0xa3   :  { %629 = vst.msk [vmem:[%s1931_s4 + $0xa0] sm:$0xff] %vm608_vm1, %v457_v31 }
  0xa4   :  { %v463_v32 = vpop.permute.xlu1 %462 }
  0xa5   :  { %632 = vst.msk [vmem:[%s1931_s4 + $0xb8] sm:$0xff] %vm608_vm1, %v463_v32 }
  0xa6   :  { %v461_v33 = vpop.permute.xlu0 %460 }
  0xa7   :  { %631 = vst.msk [vmem:[%s1931_s4 + $0xb0] sm:$0xff] %vm608_vm1, %v461_v33 }
  0xa8   :  { %v467_v4 = vpop.permute.xlu1 %466 }
  0xa9   :  { %634 = vst.msk [vmem:[%s1931_s4 + $0xc8] sm:$0xff] %vm608_vm1, %v467_v4 }
  0xaa   :  { %v465_v38 = vpop.permute.xlu0 %464 }
  0xab   :  { %633 = vst.msk [vmem:[%s1931_s4 + $0xc0] sm:$0xff] %vm608_vm1, %v465_v38 }
  0xac   :  { %v471_v39 = vpop.permute.xlu1 %470 }
  0xad   :  { %636 = vst.msk [vmem:[%s1931_s4 + $0xd8] sm:$0xff] %vm608_vm1, %v471_v39 }
  0xae   :  { %v469_v40 = vpop.permute.xlu0 %468 }
  0xaf   :  { %635 = vst.msk [vmem:[%s1931_s4 + $0xd0] sm:$0xff] %vm608_vm1, %v469_v40 }
  0xb0   :  { %v475_v42 = vpop.permute.xlu1 %474 }
  0xb1   :  { %638 = vst.msk [vmem:[%s1931_s4 + $0xe8] sm:$0xff] %vm608_vm1, %v475_v42 }
  0xb2   :  { %v473_v46 = vpop.permute.xlu0 %472 }
  0xb3   :  { %637 = vst.msk [vmem:[%s1931_s4 + $0xe0] sm:$0xff] %vm608_vm1, %v473_v46 }
  0xb4   :  { %v479_v47 = vpop.permute.xlu1 %478 }
  0xb5   :  { %640 = vst.msk [vmem:[%s1931_s4 + $0xf8] sm:$0xff] %vm608_vm1, %v479_v47 }
  0xb6   :  { %v477_v56 = vpop.permute.xlu0 %476 }
  0xb7   :  { %639 = vst.msk [vmem:[%s1931_s4 + $0xf0] sm:$0xff] %vm608_vm1, %v477_v56 }
  0xb8   :  { %v483_v57 = vpop.permute.xlu1 %482 }
  0xb9   :  { %642 = vst.msk [vmem:[%s1931_s4 + $0x108] sm:$0xff] %vm608_vm1, %v483_v57 }
  0xba   :  { %v481_v58 = vpop.permute.xlu0 %480 }
  0xbb   :  { %641 = vst.msk [vmem:[%s1931_s4 + $0x100] sm:$0xff] %vm608_vm1, %v481_v58 }
  0xbc   :  { %v487_v1 = vpop.permute.xlu1 %486 }
  0xbd   :  { %644 = vst.msk [vmem:[%s1931_s4 + $0x118] sm:$0xff] %vm608_vm1, %v487_v1 }
  0xbe   :  { %v485_v62 = vpop.permute.xlu0 %484 }
  0xbf   :  { %643 = vst.msk [vmem:[%s1931_s4 + $0x110] sm:$0xff] %vm608_vm1, %v485_v62 }
  0xc0   :  { %v491_v6 = vpop.permute.xlu1 %490 }
  0xc1   :  { %646 = vst.msk [vmem:[%s1931_s4 + $0x128] sm:$0xff] %vm608_vm1, %v491_v6 }
  0xc2   :  { %v489_v54 = vpop.permute.xlu0 %488 }
  0xc3   :  { %645 = vst.msk [vmem:[%s1931_s4 + $0x120] sm:$0xff] %vm608_vm1, %v489_v54 }
  0xc4   :  { %v495_v2 = vpop.permute.xlu1 %494 }
  0xc5   :  { %648 = vst.msk [vmem:[%s1931_s4 + $0x138] sm:$0xff] %vm608_vm1, %v495_v2 }
  0xc6   :  { %v493_v9 = vpop.permute.xlu0 %492 }
  0xc7   :  { %647 = vst.msk [vmem:[%s1931_s4 + $0x130] sm:$0xff] %vm608_vm1, %v493_v9 }
  0xc8   :  { %v499_v7 = vpop.permute.xlu1 %498 }
  0xc9   :  { %650 = vst.msk [vmem:[%s1931_s4 + $0x148] sm:$0xff] %vm608_vm1, %v499_v7 }
  0xca   :  { %v497_v8 = vpop.permute.xlu0 %496 }
  0xcb   :  { %649 = vst.msk [vmem:[%s1931_s4 + $0x140] sm:$0xff] %vm608_vm1, %v497_v8 }
  0xcc   :  { %v503_v11 = vpop.permute.xlu1 %502 }
  0xcd   :  { %652 = vst.msk [vmem:[%s1931_s4 + $0x158] sm:$0xff] %vm608_vm1, %v503_v11 }
  0xce   :  { %v501_v18 = vpop.permute.xlu0 %500 }
  0xcf   :  { %651 = vst.msk [vmem:[%s1931_s4 + $0x150] sm:$0xff] %vm608_vm1, %v501_v18 }
  0xd0   :  { %v507_v19 = vpop.permute.xlu1 %506 }
  0xd1   :  { %654 = vst.msk [vmem:[%s1931_s4 + $0x168] sm:$0xff] %vm608_vm1, %v507_v19 }
  0xd2   :  { %v505_v20 = vpop.permute.xlu0 %504 }
  0xd3   :  { %653 = vst.msk [vmem:[%s1931_s4 + $0x160] sm:$0xff] %vm608_vm1, %v505_v20 }
  0xd4   :  { %v511_v25 = vpop.permute.xlu1 %510 }
  0xd5   :  { %656 = vst.msk [vmem:[%s1931_s4 + $0x178] sm:$0xff] %vm608_vm1, %v511_v25 }
  0xd6   :  { %v509_v26 = vpop.permute.xlu0 %508 }
  0xd7   :  { %655 = vst.msk [vmem:[%s1931_s4 + $0x170] sm:$0xff] %vm608_vm1, %v509_v26 }
  0xd8   :  { %v515_v27 = vpop.permute.xlu1 %514 }
  0xd9   :  { %658 = vst.msk [vmem:[%s1931_s4 + $0x188] sm:$0xff] %vm608_vm1, %v515_v27 }
  0xda   :  { %v513_v34 = vpop.permute.xlu0 %512 }
  0xdb   :  { %657 = vst.msk [vmem:[%s1931_s4 + $0x180] sm:$0xff] %vm608_vm1, %v513_v34 }
  0xdc   :  { %v519_v41 = vpop.permute.xlu1 %518 }
  0xdd   :  { %660 = vst.msk [vmem:[%s1931_s4 + $0x198] sm:$0xff] %vm608_vm1, %v519_v41 }
  0xde   :  { %v517_v49 = vpop.permute.xlu0 %516 }
  0xdf   :  { %659 = vst.msk [vmem:[%s1931_s4 + $0x190] sm:$0xff] %vm608_vm1, %v517_v49 }
  0xe0   :  { %v523_v50 = vpop.permute.xlu1 %522 }
  0xe1   :  { %662 = vst.msk [vmem:[%s1931_s4 + $0x1a8] sm:$0xff] %vm608_vm1, %v523_v50 }
  0xe2   :  { %v521_v51 = vpop.permute.xlu0 %520 }
  0xe3   :  { %661 = vst.msk [vmem:[%s1931_s4 + $0x1a0] sm:$0xff] %vm608_vm1, %v521_v51 }
  0xe4   :  { %v527_v0 = vpop.permute.xlu1 %526 }
  0xe5   :  { %664 = vst.msk [vmem:[%s1931_s4 + $0x1b8] sm:$0xff] %vm608_vm1, %v527_v0 }
  0xe6   :  { %v525_v3 = vpop.permute.xlu0 %524 }
  0xe7   :  { %663 = vst.msk [vmem:[%s1931_s4 + $0x1b0] sm:$0xff] %vm608_vm1, %v525_v3 }
  0xe8   :  { %v531_v5 = vpop.permute.xlu1 %530 }
  0xe9   :  { %666 = vst.msk [vmem:[%s1931_s4 + $0x1c8] sm:$0xff] %vm608_vm1, %v531_v5 }
  0xea   :  { %v529_v13 = vpop.permute.xlu0 %528 }
  0xeb   :  { %665 = vst.msk [vmem:[%s1931_s4 + $0x1c0] sm:$0xff] %vm608_vm1, %v529_v13 }
  0xec   :  { %v535_v24 = vpop.permute.xlu1 %534 }
  0xed   :  { %668 = vst.msk [vmem:[%s1931_s4 + $0x1d8] sm:$0xff] %vm608_vm1, %v535_v24 }
  0xee   :  { %v533_v35 = vpop.permute.xlu0 %532 }
  0xef   :  { %667 = vst.msk [vmem:[%s1931_s4 + $0x1d0] sm:$0xff] %vm608_vm1, %v533_v35 }
  0xf0   :  { %v539_v36 = vpop.permute.xlu1 %538 }
  0xf1   :  { %670 = vst.msk [vmem:[%s1931_s4 + $0x1e8] sm:$0xff] %vm608_vm1, %v539_v36 }
  0xf2   :  { %v537_v37 = vpop.permute.xlu0 %536 }
  0xf3   :  { %669 = vst.msk [vmem:[%s1931_s4 + $0x1e0] sm:$0xff] %vm608_vm1, %v537_v37 }
  0xf4   :  { %v543_v43 = vpop.permute.xlu1 %542 }
  0xf5   :  { %672 = vst.msk [vmem:[%s1931_s4 + $0x1f8] sm:$0xff] %vm608_vm1, %v543_v43 }
  0xf6   :  { %v541_v44 = vpop.permute.xlu0 %540 }
  0xf7   :  { %671 = vst.msk [vmem:[%s1931_s4 + $0x1f0] sm:$0xff] %vm608_vm1, %v541_v44 }

</bundles_post_ra>
